<compile_context>
chip_gen: v7x
topology: tpu7x:2x2x1
jax: 0.10.0
libtpu: 0.0.40
codegen_flags: <defaults>
</compile_context>

<pallas_src>
import functools
import numpy as np
import jax
import jax.numpy as jnp
from jax import lax
from jax.experimental import pallas as pl
from jax.experimental.pallas import tpu as pltpu

EPS = 1e-5  # torch.nn.LayerNorm default eps


# ----------------------------- helpers --------------------------------------

def pos_sinusoid_embedding(seq_len, d_model):
    """Matches the PyTorch reference: sin on even cols, cos on odd cols."""
    pos = np.arange(seq_len, dtype=np.float32)[:, None]           # (S, 1)
    i = np.arange(d_model, dtype=np.float32)[None, :]              # (1, D)
    denom = np.power(10000.0, 2.0 * np.floor(i / 2.0) / d_model)   # (1, D)
    angles = pos / denom                                           # (S, D)
    emb = np.where((np.arange(d_model) % 2 == 0)[None, :],
                   np.sin(angles), np.cos(angles))
    return jnp.asarray(emb, jnp.float32)


def _layernorm(x, gamma, beta):
    mu = jnp.mean(x, axis=-1, keepdims=True)
    var = jnp.mean((x - mu) ** 2, axis=-1, keepdims=True)
    return (x - mu) * lax.rsqrt(var + EPS) * gamma + beta


def _vmem_capacity_bytes():
    try:
        return int(pltpu.get_tpu_info().vmem_capacity_bytes)
    except Exception:
        return 64 << 20  # conservative (v7x-sized) fallback


def _choose_batch_tile(B, S, D, d_ff, target_rows=256,
                       act_budget_bytes=24 << 20):
    """Pick TB (batch rows per grid step): fatten MXU M toward target_rows,
    keep >=2 batch tiles when possible (v7x: feed both TensorCores), and stay
    under a rough per-step activation VMEM budget."""
    divisors = [d for d in range(1, B + 1) if B % d == 0]

    def fits(tb):
        m = tb * S
        # rough resident f32 activation footprint per step: x/attn + qkv + ffn
        return m * (2 * D + 3 * D + d_ff) * 4 <= act_budget_bytes

    cands = [d for d in divisors if fits(d)] or [1]
    two = [d for d in cands if B // d >= 2]
    pool = two or cands
    for d in pool:
        if d * S >= target_rows:
            return d
    return pool[-1]


# ----------------------------- fused Pallas kernel ---------------------------

def encoder_kernel(num_heads,
                   x_ref, pos_ref, small_ref, wqkv_ref, wo_ref, w1_ref, w2_ref,
                   o_ref, act_sc, attn_sc):
    """One (batch_tile, layer) grid step. Running activation lives in act_sc."""
    layer = pl.program_id(1)
    num_layers = pl.num_programs(1)

    TB, S, D = x_ref.shape
    M = TB * S
    d_ff = w1_ref.shape[2]
    d_k = D // num_heads
    scale = 1.0 / np.sqrt(d_k)
    bf16 = jnp.bfloat16

    # Small per-layer params packed into one (8, Kmax) slab (lane offset 0).
    small = small_ref[0]
    g1 = small[0, :D]
    b1 = small[1, :D]
    bqkv = small[2, :3 * D]
    bo = small[3, :D]
    g2 = small[4, :D]
    b2 = small[5, :D]
    c1 = small[6, :d_ff]
    c2 = small[7, :D]

    # Layer 0: fuse "X + pos_emb" (emb dropout = identity at inference).
    @pl.when(layer == 0)
    def _():
        act_sc[...] = (x_ref[...] + pos_ref[...][None]).reshape(M, D)

    x = act_sc[...]                                   # (M, D) f32, VMEM-resident

    # ---- norm1 + multi-head self-attention (mask=None path) ----------------
    xn = _layernorm(x, g1, b1)
    qkv = jnp.dot(xn.astype(bf16), wqkv_ref[0],
                  preferred_element_type=jnp.float32) + bqkv       # (M, 3D)

    wo = wo_ref[0]                                    # (D, D) bf16
    for b in range(TB):                               # static loop over batch rows
        r0 = b * S
        acc = None
        # TODO(synk): for large S / many heads convert this static unroll to a
        # lax.fori_loop (or KV-tile grid axis) to bound vreg live ranges.
        for h in range(num_heads):
            # 1/sqrt(d_k) folded into q (S*d_k mults instead of S*S per head).
            qh = (qkv[r0:r0 + S, h * d_k:(h + 1) * d_k] * scale).astype(bf16)
            kh = qkv[r0:r0 + S, D + h * d_k:D + (h + 1) * d_k].astype(bf16)
            vh = qkv[r0:r0 + S, 2 * D + h * d_k:2 * D + (h + 1) * d_k].astype(bf16)
            # Contract d_k directly: no kh.T relayout, MXU consumes K as-is.
            s = lax.dot_general(qh, kh, (((1,), (1,)), ((), ())),
                                preferred_element_type=jnp.float32)  # (S, S)
            s = s - jnp.max(s, axis=-1, keepdims=True)
            p = jnp.exp(s)
            p = p * pl.reciprocal(jnp.sum(p, axis=-1, keepdims=True), approx=True)
            hv = jnp.dot(p.astype(bf16), vh,
                         preferred_element_type=jnp.float32)         # (S, d_k)
            # Fold W_out per head: lane-dense (S, D) accumulation, no masked
            # sub-128-lane column stores.
            proj = jnp.dot(hv.astype(bf16), wo[h * d_k:(h + 1) * d_k, :],
                           preferred_element_type=jnp.float32)       # (S, D)
            acc = proj if acc is None else acc + proj
        attn_sc[r0:r0 + S, :] = acc                   # full-lane-width row store

    y = xn + attn_sc[...] + bo                        # residual over normed input

    # ---- norm2 + position-wise FFN (Conv1d k=1 == matmul) + residual -------
    yn = _layernorm(y, g2, b2)
    # TODO(synk): on v7x with large D/d_ff, chunk w1/w2 over an inner pipelined
    # axis (pltpu.emit_pipeline) to keep resident weights under ~50 MiB.
    h1 = jnp.maximum(
        jnp.dot(yn.astype(bf16), w1_ref[0],
                preferred_element_type=jnp.float32) + c1, 0.0)
    ff = jnp.dot(h1.astype(bf16), w2_ref[0],
                 preferred_element_type=jnp.float32) + c2

    act_sc[...] = yn + ff                             # carry to next layer

    @pl.when(layer == num_layers - 1)
    def _():
        o_ref[...] = act_sc[...].reshape(TB, S, D)    # single final HBM writeback


# ----------------------------- wrapper ---------------------------------------

def encoder_forward(x, x_lens, pos_table, packed_params, num_heads):
    """x: (B, S, D) f32. packed_params: output of pack_encoder_params."""
    del x_lens  # TODO(synk): mask=None path only; variable-length masking NYI.
    B, S, D = x.shape
    small, wqkv, wo, w1, w2 = packed_params
    L = wqkv.shape[0]
    d_ff = w1.shape[2]
    pos = pos_table[:S]

    TB = _choose_batch_tile(B, S, D, d_ff)
    nb = B // TB

    def layer_spec(a):
        blk = (1,) + tuple(a.shape[1:])          # one layer's slab per grid step
        zeros = (0,) * (a.ndim - 1)
        return pl.BlockSpec(blk, lambda bi, l: (l,) + zeros)

    param_specs = [layer_spec(a) for a in packed_params]

    # VMEM budget: double-buffered per-layer weights + double-buffered x/out
    # blocks + scratch + headroom, capped at ~80% of the chip's VMEM capacity
    # (never request the whole physical VMEM -- v7x only has 64 MiB).
    per_step_param_bytes = sum(int(np.prod(a.shape[1:])) * a.dtype.itemsize
                               for a in packed_params)
    act_block_bytes = TB * S * D * 4
    needed = (2 * per_step_param_bytes
              + 2 * 2 * act_block_bytes          # x + out, double-buffered
              + 2 * TB * S * D * 4               # act_sc + attn_sc scratch
              + S * D * 4                        # pos table
              + (16 << 20))                      # compiler scratch headroom
    cap = _vmem_capacity_bytes()
    vmem_limit = int(min(max(needed, 32 << 20), int(0.8 * cap)))

    kernel = functools.partial(encoder_kernel, num_heads)
    return pl.pallas_call(
        kernel,
        out_shape=jax.ShapeDtypeStruct((B, S, D), x.dtype),
        grid_spec=pltpu.PrefetchScalarGridSpec(
            num_scalar_prefetch=0,
            grid=(nb, L),                         # batch tiles outer, layers inner
            in_specs=[pl.BlockSpec((TB, S, D), lambda bi, l: (bi, 0, 0)),  # x
                      pl.BlockSpec((S, D), lambda bi, l: (0, 0))]          # pos
                     + param_specs,
            out_specs=pl.BlockSpec((TB, S, D), lambda bi, l: (bi, 0, 0)),
            scratch_shapes=[pltpu.VMEM((TB * S, D), jnp.float32),   # act carry
                            pltpu.VMEM((TB * S, D), jnp.float32)]), # attn accum
        compiler_params=pltpu.CompilerParams(
            dimension_semantics=("parallel", "arbitrary"),
            vmem_limit_bytes=vmem_limit),
    )(x, pos, *packed_params)


# ----------------------------- params ---------------------------------------

def init_encoder_params(key, num_layers, d_model, num_heads, d_ff):
    """Deterministic synthetic parameters (shapes match the PyTorch module).
    Weights (matmul inputs) are stored in bf16; biases / LN params stay f32."""
    d_k = d_model // num_heads
    layers = []
    for l in range(num_layers):
        ks = jax.random.split(jax.random.fold_in(key, l), 16)
        std_qk = np.sqrt(2.0 / (d_model + d_k))
        std_v = np.sqrt(2.0 / (d_model + d_k))      # d_v == d_k here
        std_ff = np.sqrt(2.0 / (d_model + d_ff))

        def w(k, shape, std):
            return (jax.random.normal(k, shape, jnp.float32) * std
                    ).astype(jnp.bfloat16)

        def b(k, shape):
            return jax.random.normal(k, shape, jnp.float32) * 0.01

        g1 = jnp.ones((1, d_model), jnp.float32)
        b1 = jnp.zeros((1, d_model), jnp.float32)
        wq = w(ks[0], (d_model, num_heads * d_k), std_qk)
        bq = b(ks[1], (1, num_heads * d_k))
        wk = w(ks[2], (d_model, num_heads * d_k), std_qk)
        bk = b(ks[3], (1, num_heads * d_k))
        wv = w(ks[4], (d_model, num_heads * d_k), std_v)
        bv = b(ks[5], (1, num_heads * d_k))
        wo = w(ks[6], (num_heads * d_k, d_model), std_v)
        bo = b(ks[7], (1, d_model))
        g2 = jnp.ones((1, d_model), jnp.float32)
        b2 = jnp.zeros((1, d_model), jnp.float32)
        w1 = w(ks[8], (d_model, d_ff), std_ff)      # conv1 (k=1), pre-transposed
        c1 = b(ks[9], (1, d_ff))
        w2 = w(ks[10], (d_ff, d_model), std_ff)     # conv2 (k=1), pre-transposed
        c2 = b(ks[11], (1, d_model))
        layers.append((g1, b1, wq, bq, wk, bk, wv, bv, wo, bo,
                       g2, b2, w1, c1, w2, c2))
    return layers


def pack_encoder_params(layers, d_model, d_ff):
    """Stack per-layer params along a leading layer axis; fuse W_Q/W_K/W_V into
    one (D, 3D) projection; pack the 10 small per-layer tensors (LN params and
    biases) into a single (L, 8, Kmax) slab (one block DMA per step)."""
    L = len(layers)
    kmax = max(3 * d_model, d_ff)
    small = np.zeros((L, 8, kmax), np.float32)
    wqkv_l, wo_l, w1_l, w2_l = [], [], [], []
    for li, (g1, b1, wq, bq, wk, bk, wv, bv, wo, bo,
             g2, b2, w1, c1, w2, c2) in enumerate(layers):
        small[li, 0, :d_model] = np.asarray(g1).reshape(-1)
        small[li, 1, :d_model] = np.asarray(b1).reshape(-1)
        small[li, 2, :3 * d_model] = np.concatenate(
            [np.asarray(bq).reshape(-1), np.asarray(bk).reshape(-1),
             np.asarray(bv).reshape(-1)])
        small[li, 3, :d_model] = np.asarray(bo).reshape(-1)
        small[li, 4, :d_model] = np.asarray(g2).reshape(-1)
        small[li, 5, :d_model] = np.asarray(b2).reshape(-1)
        small[li, 6, :d_ff] = np.asarray(c1).reshape(-1)
        small[li, 7, :d_model] = np.asarray(c2).reshape(-1)
        wqkv_l.append(jnp.concatenate([wq, wk, wv], axis=-1))   # (D, 3D) bf16
        wo_l.append(wo)
        w1_l.append(w1)
        w2_l.append(w2)
    return (jnp.asarray(small),           # (L, 8, Kmax) f32
            jnp.stack(wqkv_l, axis=0),    # (L, D, 3D)  bf16
            jnp.stack(wo_l, axis=0),      # (L, D, D)   bf16
            jnp.stack(w1_l, axis=0),      # (L, D, d_ff) bf16
            jnp.stack(w2_l, axis=0))      # (L, d_ff, D) bf16


# ----------------------------- pure-JAX reference ----------------------------

def encoder_reference(x, pos_table, layers, num_heads):
    """Full-f32 reference (weights are the same bf16 values, upcast exactly)."""
    B, S, D = x.shape
    d_k = D // num_heads
    f32 = lambda a: a.astype(jnp.float32)
    out = x + pos_table[:S][None]
    for (g1, b1, wq, bq, wk, bk, wv, bv, wo, bo,
         g2, b2, w1, c1, w2, c2) in layers:
        xn = _layernorm(out, g1, b1)
        q = (xn @ f32(wq) + bq).reshape(B, S, num_heads, d_k).transpose(0, 2, 1, 3)
        k = (xn @ f32(wk) + bk).reshape(B, S, num_heads, d_k).transpose(0, 2, 1, 3)
        v = (xn @ f32(wv) + bv).reshape(B, S, num_heads, d_k).transpose(0, 2, 1, 3)
        s = jnp.einsum("bhqd,bhkd->bhqk", q, k) / np.sqrt(d_k)
        p = jax.nn.softmax(s, axis=-1)
        o = jnp.einsum("bhqk,bhkd->bhqd", p, v).transpose(0, 2, 1, 3).reshape(B, S, D)
        attn = o @ f32(wo) + bo
        y = xn + attn
        yn = _layernorm(y, g2, b2)
        ff = jnp.maximum(yn @ f32(w1) + c1, 0.0) @ f32(w2) + c2
        out = yn + ff
    return out


# ----------------------------- main ------------------------------------------

if __name__ == "__main__":
    # Small shapes consistent with the module.
    # TODO(synk): for best TPU efficiency pad D (and d_ff) to multiples of 128
    #             lanes; the demo's D=32 is kept to match the module spec.
    B, S, D = 2, 8, 32
    num_heads, d_ff, num_layers, tgt_len = 4, 64, 2, 16

    key = jax.random.PRNGKey(0)
    kx, kp = jax.random.split(key)
    x = jax.random.normal(kx, (B, S, D), jnp.float32)
    x_lens = jnp.full((B,), S, jnp.int32)

    pos_table = pos_sinusoid_embedding(tgt_len, D)
    raw_layers = init_encoder_params(kp, num_layers, D, num_heads, d_ff)
    packed = pack_encoder_params(raw_layers, D, d_ff)

    out = encoder_forward(x, x_lens, pos_table, packed, num_heads)
    out = jax.block_until_ready(out)

    ref = encoder_reference(x, pos_table, raw_layers, num_heads)
    # Tolerance accounts for bf16 matmul inputs + approx reciprocal in-kernel
    # (reference runs the same bf16-valued weights in full f32 math).
    np.testing.assert_allclose(np.asarray(out), np.asarray(ref),
                               rtol=2e-2, atol=2e-2)

    print("KERNEL_OK")
</pallas_src>

<mosaic_0001>
module attributes {stable_mosaic.version = 11 : i64} {
  func.func @encoder_kernel(%arg0: i32, %arg1: i32, %arg2: memref<1x8x32xf32, #tpu.memory_space<vmem>>, %arg3: memref<8x32xf32, #tpu.memory_space<vmem>>, %arg4: memref<1x8x96xf32, #tpu.memory_space<vmem>>, %arg5: memref<1x32x96xbf16, #tpu.memory_space<vmem>>, %arg6: memref<1x32x32xbf16, #tpu.memory_space<vmem>>, %arg7: memref<1x32x64xbf16, #tpu.memory_space<vmem>>, %arg8: memref<1x64x32xbf16, #tpu.memory_space<vmem>>, %arg9: memref<1x8x32xf32, #tpu.memory_space<vmem>>, %arg10: memref<8x32xf32, #tpu.memory_space<vmem>>, %arg11: memref<8x32xf32, #tpu.memory_space<vmem>>) attributes {dimension_semantics = [#tpu.dimension_semantics<parallel>, #tpu.dimension_semantics<arbitrary>], iteration_bounds = array<i64: 2, 2>, scalar_prefetch = 0 : i64, scratch_operands = 2 : i64, tpu.core_type = #tpu.core_type<tc>, window_params = [{transform_indices = @transform_0, window_bounds = array<i64: 1, 8, 32>}, {pipeline_mode = #tpu.pipeline_mode<synchronous>, transform_indices = @transform_1, window_bounds = array<i64: 8, 32>}, {transform_indices = @transform_2, window_bounds = array<i64: 1, 8, 96>}, {transform_indices = @transform_3, window_bounds = array<i64: 1, 32, 96>}, {transform_indices = @transform_4, window_bounds = array<i64: 1, 32, 32>}, {transform_indices = @transform_5, window_bounds = array<i64: 1, 32, 64>}, {transform_indices = @transform_6, window_bounds = array<i64: 1, 64, 32>}, {transform_indices = @transform_7, window_bounds = array<i64: 1, 8, 32>}]} {
    %c0 = arith.constant 0 : index
    %c0_0 = arith.constant 0 : index
    %c0_1 = arith.constant 0 : index
    %0 = vector.load %arg4[%c0, %c0_0, %c0_1] : memref<1x8x96xf32, #tpu.memory_space<vmem>>, vector<1x8x96xf32>
    %1 = vector.shape_cast %0 : vector<1x8x96xf32> to vector<8x96xf32>
    %2 = vector.extract_strided_slice %1 {offsets = [0, 0], sizes = [1, 32], strides = [1, 1]} : vector<8x96xf32> to vector<1x32xf32>
    %3 = vector.shape_cast %2 : vector<1x32xf32> to vector<32xf32>
    %4 = vector.extract_strided_slice %1 {offsets = [1, 0], sizes = [1, 32], strides = [1, 1]} : vector<8x96xf32> to vector<1x32xf32>
    %5 = vector.shape_cast %4 : vector<1x32xf32> to vector<32xf32>
    %6 = vector.extract_strided_slice %1 {offsets = [2, 0], sizes = [1, 96], strides = [1, 1]} : vector<8x96xf32> to vector<1x96xf32>
    %7 = vector.shape_cast %6 : vector<1x96xf32> to vector<96xf32>
    %8 = vector.extract_strided_slice %1 {offsets = [3, 0], sizes = [1, 32], strides = [1, 1]} : vector<8x96xf32> to vector<1x32xf32>
    %9 = vector.shape_cast %8 : vector<1x32xf32> to vector<32xf32>
    %10 = vector.extract_strided_slice %1 {offsets = [4, 0], sizes = [1, 32], strides = [1, 1]} : vector<8x96xf32> to vector<1x32xf32>
    %11 = vector.shape_cast %10 : vector<1x32xf32> to vector<32xf32>
    %12 = vector.extract_strided_slice %1 {offsets = [5, 0], sizes = [1, 32], strides = [1, 1]} : vector<8x96xf32> to vector<1x32xf32>
    %13 = vector.shape_cast %12 : vector<1x32xf32> to vector<32xf32>
    %14 = vector.extract_strided_slice %1 {offsets = [6, 0], sizes = [1, 64], strides = [1, 1]} : vector<8x96xf32> to vector<1x64xf32>
    %15 = vector.shape_cast %14 : vector<1x64xf32> to vector<64xf32>
    %16 = vector.extract_strided_slice %1 {offsets = [7, 0], sizes = [1, 32], strides = [1, 1]} : vector<8x96xf32> to vector<1x32xf32>
    %17 = vector.shape_cast %16 : vector<1x32xf32> to vector<32xf32>
    %c0_i32 = arith.constant 0 : i32
    %18 = arith.cmpi eq, %arg1, %c0_i32 : i32
    %19 = arith.extui %18 : i1 to i32
    %c0_i32_2 = arith.constant 0 : i32
    %20 = arith.cmpi ne, %19, %c0_i32_2 : i32
    scf.if %20 {
      %c0_61 = arith.constant 0 : index
      %c0_62 = arith.constant 0 : index
      %c0_63 = arith.constant 0 : index
      %205 = vector.load %arg2[%c0_61, %c0_62, %c0_63] : memref<1x8x32xf32, #tpu.memory_space<vmem>>, vector<1x8x32xf32>
      %c0_64 = arith.constant 0 : index
      %c0_65 = arith.constant 0 : index
      %206 = vector.load %arg3[%c0_64, %c0_65] : memref<8x32xf32, #tpu.memory_space<vmem>>, vector<8x32xf32>
      %207 = vector.shape_cast %206 : vector<8x32xf32> to vector<1x8x32xf32>
      %208 = arith.addf %205, %207 : vector<1x8x32xf32>
      %209 = vector.shape_cast %208 : vector<1x8x32xf32> to vector<8x32xf32>
      %c0_66 = arith.constant 0 : index
      %c0_67 = arith.constant 0 : index
      %210 = vector.load %arg10[%c0_66, %c0_67] : memref<8x32xf32, #tpu.memory_space<vmem>>, vector<8x32xf32>
      tpu.vector_store %arg10[%c0_66, %c0_67], %209 {strides = array<i32>} : memref<8x32xf32, #tpu.memory_space<vmem>>, vector<8x32xf32>,
    } else {
    }
    %c0_3 = arith.constant 0 : index
    %c0_4 = arith.constant 0 : index
    %21 = vector.load %arg10[%c0_3, %c0_4] : memref<8x32xf32, #tpu.memory_space<vmem>>, vector<8x32xf32>
    %cst = arith.constant dense<0.000000e+00> : vector<8xf32>
    %22 = vector.multi_reduction <add>, %21, %cst [1] : vector<8x32xf32> to vector<8xf32>
    %23 = vector.shape_cast %22 : vector<8xf32> to vector<8x1xf32>
    %cst_5 = arith.constant 3.200000e+01 : f32
    %24 = vector.broadcast %cst_5 : f32 to vector<8x1xf32>
    %25 = arith.divf %23, %24 : vector<8x1xf32>
    %26 = vector.broadcast %25 : vector<8x1xf32> to vector<8x32xf32>
    %27 = arith.subf %21, %26 : vector<8x32xf32>
    %28 = arith.mulf %27, %27 : vector<8x32xf32>
    %cst_6 = arith.constant dense<0.000000e+00> : vector<8xf32>
    %29 = vector.multi_reduction <add>, %28, %cst_6 [1] : vector<8x32xf32> to vector<8xf32>
    %30 = vector.shape_cast %29 : vector<8xf32> to vector<8x1xf32>
    %cst_7 = arith.constant 3.200000e+01 : f32
    %31 = vector.broadcast %cst_7 : f32 to vector<8x1xf32>
    %32 = arith.divf %30, %31 : vector<8x1xf32>
    %33 = vector.broadcast %25 : vector<8x1xf32> to vector<8x32xf32>
    %34 = arith.subf %21, %33 : vector<8x32xf32>
    %cst_8 = arith.constant 9.99999974E-6 : f32
    %35 = vector.broadcast %cst_8 : f32 to vector<8x1xf32>
    %36 = arith.addf %32, %35 : vector<8x1xf32>
    %37 = math.rsqrt %36 : vector<8x1xf32>
    %38 = vector.broadcast %37 : vector<8x1xf32> to vector<8x32xf32>
    %39 = arith.mulf %34, %38 : vector<8x32xf32>
    %40 = vector.shape_cast %3 : vector<32xf32> to vector<1x32xf32>
    %41 = vector.broadcast %40 : vector<1x32xf32> to vector<8x32xf32>
    %42 = arith.mulf %39, %41 : vector<8x32xf32>
    %43 = vector.shape_cast %5 : vector<32xf32> to vector<1x32xf32>
    %44 = vector.broadcast %43 : vector<1x32xf32> to vector<8x32xf32>
    %45 = arith.addf %42, %44 : vector<8x32xf32>
    %46 = arith.truncf %45 : vector<8x32xf32> to vector<8x32xbf16>
    %c0_9 = arith.constant 0 : index
    %c0_10 = arith.constant 0 : index
    %c0_11 = arith.constant 0 : index
    %47 = vector.load %arg5[%c0_9, %c0_10, %c0_11] : memref<1x32x96xbf16, #tpu.memory_space<vmem>>, vector<1x32x96xbf16>
    %48 = vector.shape_cast %47 : vector<1x32x96xbf16> to vector<32x96xbf16>
    %cst_12 = arith.constant dense<0.000000e+00> : vector<8x96xf32>
    %49 = tpu.matmul %46, %48, %cst_12 {dimension_numbers = #tpu.dot_dimension_numbers<[1], [0], [0], [1], [0, 0, 1, 1], [], []>} : vector<8x32xbf16>, vector<32x96xbf16>, vector<8x96xf32> -> vector<8x96xf32>
    %50 = vector.shape_cast %7 : vector<96xf32> to vector<1x96xf32>
    %51 = vector.broadcast %50 : vector<1x96xf32> to vector<8x96xf32>
    %52 = arith.addf %49, %51 : vector<8x96xf32>
    %c0_13 = arith.constant 0 : index
    %c0_14 = arith.constant 0 : index
    %c0_15 = arith.constant 0 : index
    %53 = vector.load %arg6[%c0_13, %c0_14, %c0_15] : memref<1x32x32xbf16, #tpu.memory_space<vmem>>, vector<1x32x32xbf16>
    %54 = vector.shape_cast %53 : vector<1x32x32xbf16> to vector<32x32xbf16>
    %55 = vector.extract_strided_slice %52 {offsets = [0, 0], sizes = [8, 8], strides = [1, 1]} : vector<8x96xf32> to vector<8x8xf32>
    %cst_16 = arith.constant 0.353553385 : f32
    %56 = vector.broadcast %cst_16 : f32 to vector<8x8xf32>
    %57 = arith.mulf %55, %56 : vector<8x8xf32>
    %58 = arith.truncf %57 : vector<8x8xf32> to vector<8x8xbf16>
    %59 = vector.extract_strided_slice %52 {offsets = [0, 32], sizes = [8, 8], strides = [1, 1]} : vector<8x96xf32> to vector<8x8xf32>
    %60 = arith.truncf %59 : vector<8x8xf32> to vector<8x8xbf16>
    %61 = vector.extract_strided_slice %52 {offsets = [0, 64], sizes = [8, 8], strides = [1, 1]} : vector<8x96xf32> to vector<8x8xf32>
    %62 = arith.truncf %61 : vector<8x8xf32> to vector<8x8xbf16>
    %cst_17 = arith.constant dense<0.000000e+00> : vector<8x8xf32>
    %63 = tpu.matmul %58, %60, %cst_17 {dimension_numbers = #tpu.dot_dimension_numbers<[1], [1], [0], [0], [0, 0, 1, 0], [], []>} : vector<8x8xbf16>, vector<8x8xbf16>, vector<8x8xf32> -> vector<8x8xf32>
    %cst_18 = arith.constant dense<0xFF800000> : vector<8xf32>
    %64 = vector.multi_reduction <maximumf>, %63, %cst_18 [1] : vector<8x8xf32> to vector<8xf32>
    %65 = vector.shape_cast %64 : vector<8xf32> to vector<8x1xf32>
    %66 = vector.broadcast %65 : vector<8x1xf32> to vector<8x8xf32>
    %67 = arith.subf %63, %66 : vector<8x8xf32>
    %68 = math.exp %67 : vector<8x8xf32>
    %cst_19 = arith.constant dense<0.000000e+00> : vector<8xf32>
    %69 = vector.multi_reduction <add>, %68, %cst_19 [1] : vector<8x8xf32> to vector<8xf32>
    %70 = vector.shape_cast %69 : vector<8xf32> to vector<8x1xf32>
    %71 = tpu.reciprocal %70 {approx = true} : vector<8x1xf32> -> vector<8x1xf32>
    %72 = vector.broadcast %71 : vector<8x1xf32> to vector<8x8xf32>
    %73 = arith.mulf %68, %72 : vector<8x8xf32>
    %74 = arith.truncf %73 : vector<8x8xf32> to vector<8x8xbf16>
    %cst_20 = arith.constant dense<0.000000e+00> : vector<8x8xf32>
    %75 = tpu.matmul %74, %62, %cst_20 {dimension_numbers = #tpu.dot_dimension_numbers<[1], [0], [0], [1], [0, 0, 1, 1], [], []>} : vector<8x8xbf16>, vector<8x8xbf16>, vector<8x8xf32> -> vector<8x8xf32>
    %76 = arith.truncf %75 : vector<8x8xf32> to vector<8x8xbf16>
    %77 = vector.extract_strided_slice %54 {offsets = [0, 0], sizes = [8, 32], strides = [1, 1]} : vector<32x32xbf16> to vector<8x32xbf16>
    %cst_21 = arith.constant dense<0.000000e+00> : vector<8x32xf32>
    %78 = tpu.matmul %76, %77, %cst_21 {dimension_numbers = #tpu.dot_dimension_numbers<[1], [0], [0], [1], [0, 0, 1, 1], [], []>} : vector<8x8xbf16>, vector<8x32xbf16>, vector<8x32xf32> -> vector<8x32xf32>
    %79 = vector.extract_strided_slice %52 {offsets = [0, 8], sizes = [8, 8], strides = [1, 1]} : vector<8x96xf32> to vector<8x8xf32>
    %cst_22 = arith.constant 0.353553385 : f32
    %80 = vector.broadcast %cst_22 : f32 to vector<8x8xf32>
    %81 = arith.mulf %79, %80 : vector<8x8xf32>
    %82 = arith.truncf %81 : vector<8x8xf32> to vector<8x8xbf16>
    %83 = vector.extract_strided_slice %52 {offsets = [0, 40], sizes = [8, 8], strides = [1, 1]} : vector<8x96xf32> to vector<8x8xf32>
    %84 = arith.truncf %83 : vector<8x8xf32> to vector<8x8xbf16>
    %85 = vector.extract_strided_slice %52 {offsets = [0, 72], sizes = [8, 8], strides = [1, 1]} : vector<8x96xf32> to vector<8x8xf32>
    %86 = arith.truncf %85 : vector<8x8xf32> to vector<8x8xbf16>
    %cst_23 = arith.constant dense<0.000000e+00> : vector<8x8xf32>
    %87 = tpu.matmul %82, %84, %cst_23 {dimension_numbers = #tpu.dot_dimension_numbers<[1], [1], [0], [0], [0, 0, 1, 0], [], []>} : vector<8x8xbf16>, vector<8x8xbf16>, vector<8x8xf32> -> vector<8x8xf32>
    %cst_24 = arith.constant dense<0xFF800000> : vector<8xf32>
    %88 = vector.multi_reduction <maximumf>, %87, %cst_24 [1] : vector<8x8xf32> to vector<8xf32>
    %89 = vector.shape_cast %88 : vector<8xf32> to vector<8x1xf32>
    %90 = vector.broadcast %89 : vector<8x1xf32> to vector<8x8xf32>
    %91 = arith.subf %87, %90 : vector<8x8xf32>
    %92 = math.exp %91 : vector<8x8xf32>
    %cst_25 = arith.constant dense<0.000000e+00> : vector<8xf32>
    %93 = vector.multi_reduction <add>, %92, %cst_25 [1] : vector<8x8xf32> to vector<8xf32>
    %94 = vector.shape_cast %93 : vector<8xf32> to vector<8x1xf32>
    %95 = tpu.reciprocal %94 {approx = true} : vector<8x1xf32> -> vector<8x1xf32>
    %96 = vector.broadcast %95 : vector<8x1xf32> to vector<8x8xf32>
    %97 = arith.mulf %92, %96 : vector<8x8xf32>
    %98 = arith.truncf %97 : vector<8x8xf32> to vector<8x8xbf16>
    %cst_26 = arith.constant dense<0.000000e+00> : vector<8x8xf32>
    %99 = tpu.matmul %98, %86, %cst_26 {dimension_numbers = #tpu.dot_dimension_numbers<[1], [0], [0], [1], [0, 0, 1, 1], [], []>} : vector<8x8xbf16>, vector<8x8xbf16>, vector<8x8xf32> -> vector<8x8xf32>
    %100 = arith.truncf %99 : vector<8x8xf32> to vector<8x8xbf16>
    %101 = vector.extract_strided_slice %54 {offsets = [8, 0], sizes = [8, 32], strides = [1, 1]} : vector<32x32xbf16> to vector<8x32xbf16>
    %cst_27 = arith.constant dense<0.000000e+00> : vector<8x32xf32>
    %102 = tpu.matmul %100, %101, %cst_27 {dimension_numbers = #tpu.dot_dimension_numbers<[1], [0], [0], [1], [0, 0, 1, 1], [], []>} : vector<8x8xbf16>, vector<8x32xbf16>, vector<8x32xf32> -> vector<8x32xf32>
    %103 = arith.addf %78, %102 : vector<8x32xf32>
    %104 = vector.extract_strided_slice %52 {offsets = [0, 16], sizes = [8, 8], strides = [1, 1]} : vector<8x96xf32> to vector<8x8xf32>
    %cst_28 = arith.constant 0.353553385 : f32
    %105 = vector.broadcast %cst_28 : f32 to vector<8x8xf32>
    %106 = arith.mulf %104, %105 : vector<8x8xf32>
    %107 = arith.truncf %106 : vector<8x8xf32> to vector<8x8xbf16>
    %108 = vector.extract_strided_slice %52 {offsets = [0, 48], sizes = [8, 8], strides = [1, 1]} : vector<8x96xf32> to vector<8x8xf32>
    %109 = arith.truncf %108 : vector<8x8xf32> to vector<8x8xbf16>
    %110 = vector.extract_strided_slice %52 {offsets = [0, 80], sizes = [8, 8], strides = [1, 1]} : vector<8x96xf32> to vector<8x8xf32>
    %111 = arith.truncf %110 : vector<8x8xf32> to vector<8x8xbf16>
    %cst_29 = arith.constant dense<0.000000e+00> : vector<8x8xf32>
    %112 = tpu.matmul %107, %109, %cst_29 {dimension_numbers = #tpu.dot_dimension_numbers<[1], [1], [0], [0], [0, 0, 1, 0], [], []>} : vector<8x8xbf16>, vector<8x8xbf16>, vector<8x8xf32> -> vector<8x8xf32>
    %cst_30 = arith.constant dense<0xFF800000> : vector<8xf32>
    %113 = vector.multi_reduction <maximumf>, %112, %cst_30 [1] : vector<8x8xf32> to vector<8xf32>
    %114 = vector.shape_cast %113 : vector<8xf32> to vector<8x1xf32>
    %115 = vector.broadcast %114 : vector<8x1xf32> to vector<8x8xf32>
    %116 = arith.subf %112, %115 : vector<8x8xf32>
    %117 = math.exp %116 : vector<8x8xf32>
    %cst_31 = arith.constant dense<0.000000e+00> : vector<8xf32>
    %118 = vector.multi_reduction <add>, %117, %cst_31 [1] : vector<8x8xf32> to vector<8xf32>
    %119 = vector.shape_cast %118 : vector<8xf32> to vector<8x1xf32>
    %120 = tpu.reciprocal %119 {approx = true} : vector<8x1xf32> -> vector<8x1xf32>
    %121 = vector.broadcast %120 : vector<8x1xf32> to vector<8x8xf32>
    %122 = arith.mulf %117, %121 : vector<8x8xf32>
    %123 = arith.truncf %122 : vector<8x8xf32> to vector<8x8xbf16>
    %cst_32 = arith.constant dense<0.000000e+00> : vector<8x8xf32>
    %124 = tpu.matmul %123, %111, %cst_32 {dimension_numbers = #tpu.dot_dimension_numbers<[1], [0], [0], [1], [0, 0, 1, 1], [], []>} : vector<8x8xbf16>, vector<8x8xbf16>, vector<8x8xf32> -> vector<8x8xf32>
    %125 = arith.truncf %124 : vector<8x8xf32> to vector<8x8xbf16>
    %126 = vector.extract_strided_slice %54 {offsets = [16, 0], sizes = [8, 32], strides = [1, 1]} : vector<32x32xbf16> to vector<8x32xbf16>
    %cst_33 = arith.constant dense<0.000000e+00> : vector<8x32xf32>
    %127 = tpu.matmul %125, %126, %cst_33 {dimension_numbers = #tpu.dot_dimension_numbers<[1], [0], [0], [1], [0, 0, 1, 1], [], []>} : vector<8x8xbf16>, vector<8x32xbf16>, vector<8x32xf32> -> vector<8x32xf32>
    %128 = arith.addf %103, %127 : vector<8x32xf32>
    %129 = vector.extract_strided_slice %52 {offsets = [0, 24], sizes = [8, 8], strides = [1, 1]} : vector<8x96xf32> to vector<8x8xf32>
    %cst_34 = arith.constant 0.353553385 : f32
    %130 = vector.broadcast %cst_34 : f32 to vector<8x8xf32>
    %131 = arith.mulf %129, %130 : vector<8x8xf32>
    %132 = arith.truncf %131 : vector<8x8xf32> to vector<8x8xbf16>
    %133 = vector.extract_strided_slice %52 {offsets = [0, 56], sizes = [8, 8], strides = [1, 1]} : vector<8x96xf32> to vector<8x8xf32>
    %134 = arith.truncf %133 : vector<8x8xf32> to vector<8x8xbf16>
    %135 = vector.extract_strided_slice %52 {offsets = [0, 88], sizes = [8, 8], strides = [1, 1]} : vector<8x96xf32> to vector<8x8xf32>
    %136 = arith.truncf %135 : vector<8x8xf32> to vector<8x8xbf16>
    %cst_35 = arith.constant dense<0.000000e+00> : vector<8x8xf32>
    %137 = tpu.matmul %132, %134, %cst_35 {dimension_numbers = #tpu.dot_dimension_numbers<[1], [1], [0], [0], [0, 0, 1, 0], [], []>} : vector<8x8xbf16>, vector<8x8xbf16>, vector<8x8xf32> -> vector<8x8xf32>
    %cst_36 = arith.constant dense<0xFF800000> : vector<8xf32>
    %138 = vector.multi_reduction <maximumf>, %137, %cst_36 [1] : vector<8x8xf32> to vector<8xf32>
    %139 = vector.shape_cast %138 : vector<8xf32> to vector<8x1xf32>
    %140 = vector.broadcast %139 : vector<8x1xf32> to vector<8x8xf32>
    %141 = arith.subf %137, %140 : vector<8x8xf32>
    %142 = math.exp %141 : vector<8x8xf32>
    %cst_37 = arith.constant dense<0.000000e+00> : vector<8xf32>
    %143 = vector.multi_reduction <add>, %142, %cst_37 [1] : vector<8x8xf32> to vector<8xf32>
    %144 = vector.shape_cast %143 : vector<8xf32> to vector<8x1xf32>
    %145 = tpu.reciprocal %144 {approx = true} : vector<8x1xf32> -> vector<8x1xf32>
    %146 = vector.broadcast %145 : vector<8x1xf32> to vector<8x8xf32>
    %147 = arith.mulf %142, %146 : vector<8x8xf32>
    %148 = arith.truncf %147 : vector<8x8xf32> to vector<8x8xbf16>
    %cst_38 = arith.constant dense<0.000000e+00> : vector<8x8xf32>
    %149 = tpu.matmul %148, %136, %cst_38 {dimension_numbers = #tpu.dot_dimension_numbers<[1], [0], [0], [1], [0, 0, 1, 1], [], []>} : vector<8x8xbf16>, vector<8x8xbf16>, vector<8x8xf32> -> vector<8x8xf32>
    %150 = arith.truncf %149 : vector<8x8xf32> to vector<8x8xbf16>
    %151 = vector.extract_strided_slice %54 {offsets = [24, 0], sizes = [8, 32], strides = [1, 1]} : vector<32x32xbf16> to vector<8x32xbf16>
    %cst_39 = arith.constant dense<0.000000e+00> : vector<8x32xf32>
    %152 = tpu.matmul %150, %151, %cst_39 {dimension_numbers = #tpu.dot_dimension_numbers<[1], [0], [0], [1], [0, 0, 1, 1], [], []>} : vector<8x8xbf16>, vector<8x32xbf16>, vector<8x32xf32> -> vector<8x32xf32>
    %153 = arith.addf %128, %152 : vector<8x32xf32>
    %c0_40 = arith.constant 0 : index
    %c0_41 = arith.constant 0 : index
    %154 = vector.load %arg11[%c0_40, %c0_41] : memref<8x32xf32, #tpu.memory_space<vmem>>, vector<8x32xf32>
    tpu.vector_store %arg11[%c0_40, %c0_41], %153 {strides = array<i32>} : memref<8x32xf32, #tpu.memory_space<vmem>>, vector<8x32xf32>,
    %c0_42 = arith.constant 0 : index
    %c0_43 = arith.constant 0 : index
    %155 = vector.load %arg11[%c0_42, %c0_43] : memref<8x32xf32, #tpu.memory_space<vmem>>, vector<8x32xf32>
    %156 = arith.addf %45, %155 : vector<8x32xf32>
    %157 = vector.shape_cast %9 : vector<32xf32> to vector<1x32xf32>
    %158 = vector.broadcast %157 : vector<1x32xf32> to vector<8x32xf32>
    %159 = arith.addf %156, %158 : vector<8x32xf32>
    %cst_44 = arith.constant dense<0.000000e+00> : vector<8xf32>
    %160 = vector.multi_reduction <add>, %159, %cst_44 [1] : vector<8x32xf32> to vector<8xf32>
    %161 = vector.shape_cast %160 : vector<8xf32> to vector<8x1xf32>
    %cst_45 = arith.constant 3.200000e+01 : f32
    %162 = vector.broadcast %cst_45 : f32 to vector<8x1xf32>
    %163 = arith.divf %161, %162 : vector<8x1xf32>
    %164 = vector.broadcast %163 : vector<8x1xf32> to vector<8x32xf32>
    %165 = arith.subf %159, %164 : vector<8x32xf32>
    %166 = arith.mulf %165, %165 : vector<8x32xf32>
    %cst_46 = arith.constant dense<0.000000e+00> : vector<8xf32>
    %167 = vector.multi_reduction <add>, %166, %cst_46 [1] : vector<8x32xf32> to vector<8xf32>
    %168 = vector.shape_cast %167 : vector<8xf32> to vector<8x1xf32>
    %cst_47 = arith.constant 3.200000e+01 : f32
    %169 = vector.broadcast %cst_47 : f32 to vector<8x1xf32>
    %170 = arith.divf %168, %169 : vector<8x1xf32>
    %171 = vector.broadcast %163 : vector<8x1xf32> to vector<8x32xf32>
    %172 = arith.subf %159, %171 : vector<8x32xf32>
    %cst_48 = arith.constant 9.99999974E-6 : f32
    %173 = vector.broadcast %cst_48 : f32 to vector<8x1xf32>
    %174 = arith.addf %170, %173 : vector<8x1xf32>
    %175 = math.rsqrt %174 : vector<8x1xf32>
    %176 = vector.broadcast %175 : vector<8x1xf32> to vector<8x32xf32>
    %177 = arith.mulf %172, %176 : vector<8x32xf32>
    %178 = vector.shape_cast %11 : vector<32xf32> to vector<1x32xf32>
    %179 = vector.broadcast %178 : vector<1x32xf32> to vector<8x32xf32>
    %180 = arith.mulf %177, %179 : vector<8x32xf32>
    %181 = vector.shape_cast %13 : vector<32xf32> to vector<1x32xf32>
    %182 = vector.broadcast %181 : vector<1x32xf32> to vector<8x32xf32>
    %183 = arith.addf %180, %182 : vector<8x32xf32>
    %184 = arith.truncf %183 : vector<8x32xf32> to vector<8x32xbf16>
    %c0_49 = arith.constant 0 : index
    %c0_50 = arith.constant 0 : index
    %c0_51 = arith.constant 0 : index
    %185 = vector.load %arg7[%c0_49, %c0_50, %c0_51] : memref<1x32x64xbf16, #tpu.memory_space<vmem>>, vector<1x32x64xbf16>
    %186 = vector.shape_cast %185 : vector<1x32x64xbf16> to vector<32x64xbf16>
    %cst_52 = arith.constant dense<0.000000e+00> : vector<8x64xf32>
    %187 = tpu.matmul %184, %186, %cst_52 {dimension_numbers = #tpu.dot_dimension_numbers<[1], [0], [0], [1], [0, 0, 1, 1], [], []>} : vector<8x32xbf16>, vector<32x64xbf16>, vector<8x64xf32> -> vector<8x64xf32>
    %188 = vector.shape_cast %15 : vector<64xf32> to vector<1x64xf32>
    %189 = vector.broadcast %188 : vector<1x64xf32> to vector<8x64xf32>
    %190 = arith.addf %187, %189 : vector<8x64xf32>
    %cst_53 = arith.constant 0.000000e+00 : f32
    %191 = vector.broadcast %cst_53 : f32 to vector<8x64xf32>
    %192 = arith.maximumf %190, %191 : vector<8x64xf32>
    %193 = arith.truncf %192 : vector<8x64xf32> to vector<8x64xbf16>
    %c0_54 = arith.constant 0 : index
    %c0_55 = arith.constant 0 : index
    %c0_56 = arith.constant 0 : index
    %194 = vector.load %arg8[%c0_54, %c0_55, %c0_56] : memref<1x64x32xbf16, #tpu.memory_space<vmem>>, vector<1x64x32xbf16>
    %195 = vector.shape_cast %194 : vector<1x64x32xbf16> to vector<64x32xbf16>
    %cst_57 = arith.constant dense<0.000000e+00> : vector<8x32xf32>
    %196 = tpu.matmul %193, %195, %cst_57 {dimension_numbers = #tpu.dot_dimension_numbers<[1], [0], [0], [1], [0, 0, 1, 1], [], []>} : vector<8x64xbf16>, vector<64x32xbf16>, vector<8x32xf32> -> vector<8x32xf32>
    %197 = vector.shape_cast %17 : vector<32xf32> to vector<1x32xf32>
    %198 = vector.broadcast %197 : vector<1x32xf32> to vector<8x32xf32>
    %199 = arith.addf %196, %198 : vector<8x32xf32>
    %200 = arith.addf %183, %199 : vector<8x32xf32>
    %c0_58 = arith.constant 0 : index
    %c0_59 = arith.constant 0 : index
    %201 = vector.load %arg10[%c0_58, %c0_59] : memref<8x32xf32, #tpu.memory_space<vmem>>, vector<8x32xf32>
    tpu.vector_store %arg10[%c0_58, %c0_59], %200 {strides = array<i32>} : memref<8x32xf32, #tpu.memory_space<vmem>>, vector<8x32xf32>,
    %c1_i32 = arith.constant 1 : i32
    %202 = arith.cmpi eq, %arg1, %c1_i32 : i32
    %203 = arith.extui %202 : i1 to i32
    %c0_i32_60 = arith.constant 0 : i32
    %204 = arith.cmpi ne, %203, %c0_i32_60 : i32
    scf.if %204 {
      %c0_61 = arith.constant 0 : index
      %c0_62 = arith.constant 0 : index
      %205 = vector.load %arg10[%c0_61, %c0_62] : memref<8x32xf32, #tpu.memory_space<vmem>>, vector<8x32xf32>
      %206 = vector.shape_cast %205 : vector<8x32xf32> to vector<1x8x32xf32>
      %c0_63 = arith.constant 0 : index
      %c0_64 = arith.constant 0 : index
      %c0_65 = arith.constant 0 : index
      %207 = vector.load %arg9[%c0_63, %c0_64, %c0_65] : memref<1x8x32xf32, #tpu.memory_space<vmem>>, vector<1x8x32xf32>
      tpu.vector_store %arg9[%c0_63, %c0_64, %c0_65], %206 {strides = array<i32>} : memref<1x8x32xf32, #tpu.memory_space<vmem>>, vector<1x8x32xf32>,
    } else {
    }
    return
  }
  func.func @transform_0(%arg0: i32, %arg1: i32) -> (i32, i32, i32) {
    %c0_i32 = arith.constant 0 : i32
    %c0_i32_0 = arith.constant 0 : i32
    %c0_i32_1 = arith.constant 0 : i32
    return %arg0, %c0_i32, %c0_i32_0 : i32, i32, i32
  }
  func.func @transform_1(%arg0: i32, %arg1: i32) -> (i32, i32) {
    %c0_i32 = arith.constant 0 : i32
    %c0_i32_0 = arith.constant 0 : i32
    %c0_i32_1 = arith.constant 0 : i32
    return %c0_i32, %c0_i32_0 : i32, i32
  }
  func.func @transform_2(%arg0: i32, %arg1: i32) -> (i32, i32, i32) {
    %c0_i32 = arith.constant 0 : i32
    %c0_i32_0 = arith.constant 0 : i32
    %c0_i32_1 = arith.constant 0 : i32
    return %arg1, %c0_i32, %c0_i32_0 : i32, i32, i32
  }
  func.func @transform_3(%arg0: i32, %arg1: i32) -> (i32, i32, i32) {
    %c0_i32 = arith.constant 0 : i32
    %c0_i32_0 = arith.constant 0 : i32
    %c0_i32_1 = arith.constant 0 : i32
    return %arg1, %c0_i32, %c0_i32_0 : i32, i32, i32
  }
  func.func @transform_4(%arg0: i32, %arg1: i32) -> (i32, i32, i32) {
    %c0_i32 = arith.constant 0 : i32
    %c0_i32_0 = arith.constant 0 : i32
    %c0_i32_1 = arith.constant 0 : i32
    return %arg1, %c0_i32, %c0_i32_0 : i32, i32, i32
  }
  func.func @transform_5(%arg0: i32, %arg1: i32) -> (i32, i32, i32) {
    %c0_i32 = arith.constant 0 : i32
    %c0_i32_0 = arith.constant 0 : i32
    %c0_i32_1 = arith.constant 0 : i32
    return %arg1, %c0_i32, %c0_i32_0 : i32, i32, i32
  }
  func.func @transform_6(%arg0: i32, %arg1: i32) -> (i32, i32, i32) {
    %c0_i32 = arith.constant 0 : i32
    %c0_i32_0 = arith.constant 0 : i32
    %c0_i32_1 = arith.constant 0 : i32
    return %arg1, %c0_i32, %c0_i32_0 : i32, i32, i32
  }
  func.func @transform_7(%arg0: i32, %arg1: i32) -> (i32, i32, i32) {
    %c0_i32 = arith.constant 0 : i32
    %c0_i32_0 = arith.constant 0 : i32
    %c0_i32_1 = arith.constant 0 : i32
    return %arg0, %c0_i32, %c0_i32_0 : i32, i32, i32
  }
}

</mosaic_0001>

<bundles_post_ra>
// kernel: tpu_custom_call.1
= control target key start
LH: loop header
LB: loop body
LE: loop exit
PB: predicated region body
PF: predicated region fallthrough
CT: control target
= control target key end

     0   :  { %s2668_s0 = inlined_call_operand.hbm [shape: f32[2,8,32], index: 0, kind: input, shape index: {}]   ;;  %s2669_s1 = inlined_call_operand.hbm [shape: f32[8,32], index: 1, kind: input, shape index: {}]   ;;  %s2670_s2 = inlined_call_operand.hbm [shape: f32[2,8,96], index: 2, kind: input, shape index: {}]   ;;  %s2671_s3 = inlined_call_operand.vmem [shape: bf16[2,32,96], index: 3, kind: input, shape index: {}]   ;;  %s2672_s4 = inlined_call_operand.vmem [shape: bf16[2,32,32], index: 4, kind: input, shape index: {}]   ;;  %s2673_s5 = inlined_call_operand.vmem [shape: bf16[2,32,64], index: 5, kind: input, shape index: {}]   ;;  %s2674_s6 = inlined_call_operand.vmem [shape: bf16[2,64,32], index: 6, kind: input, shape index: {}]   ;;  %s2675_s7 = inlined_call_operand.hbm [shape: f32[2,8,32], index: 7, kind: output, shape index: {}]  }
   0x1   :  { %2693 = sst [smem:[#allocation22_spill]] %s2668_s0 }
   0x2   :  { %2694 = sst [smem:[#allocation23_spill]] %s2669_s1 }
   0x3   :  { %2695 = sst [smem:[#allocation24_spill]] %s2670_s2 }
   0x4   :  { %2696 = sst [smem:[#allocation25_spill]] %s2674_s6 }
   0x5   :  { %2697 = sst [smem:[#allocation26_spill]] %s2675_s7 }
   0x6   :  { %12 = vsyncpa [#allocation5], 0 }
   0x7   :  { %14 = vsyncpa [#allocation5 + $0x1], 0 }
   0x8   :  { %15 = vsyncpa [#allocation8], 0 }
   0x9   :  { %16 = vsyncpa [#allocation6], 0 }
   0xa   :  { %18 = vsyncpa [#allocation6 + $0x1], 0  ;;  %s2169_s24 = smov 0   ;;  %s2171_s25 = smov 0  }
   0xb   :  { %s2173_s26 = smov 0   ;;  %s2175_s27 = smov 0  }
   0xc   :  { %s2177_s28 = smov 0   ;;  %s2179_s29 = smov 0  }
   0xd   :  { %s2181_s30 = smov 0   ;;  %s2183_s8 = smov 0  }
   0xe   :  { %s2185_s9 = smov 0   ;;  %s2187_s10 = smov 0  }
   0xf   :  { %s2189_s11 = smov 0  }
  0x10 LB: > { %2698 = sst [smem:[#allocation15_spill]] %s2082_s27  ;;  %p50_p0 = scmp.ne.s32.totalorder %s2090_s29, %s2086_s28  ;;  %s2110_s11 = sphi %s2189_s11, %s24_s11   ;;  %s2106_s10 = sphi %s2187_s10, %s2740_s10   ;;  %s2102_s9 = sphi %s2185_s9, %s2748_s9   ;;  %s2098_s8 = sphi %s2183_s8, %s2738_s8   ;;  %s2094_s30 = sphi %s2181_s30, %s2747_s30   ;;  %s2090_s29 = sphi %s2179_s29, %s2746_s29   ;;  %s2086_s28 = sphi %s2177_s28, %s2745_s28   ;;  %s2082_s27 = sphi %s2175_s27, %s2744_s27   ;;  %s2078_s26 = sphi %s2173_s26, %s2743_s26   ;;  %s2074_s25 = sphi %s2171_s25, %s2742_s25   ;;  %s2070_s24 = sphi %s2169_s24, %s2741_s24  }
  0x11   : > { %2699 = sst [smem:[#allocation16_spill]] %s2098_s8  ;;  %p2677_p1 = scmp.eq.s32.totalorder %s2110_s11, 0 }
  0x12   : > { %2700 = sst [smem:[#allocation17_spill]] %s2106_s10  ;;  %p2676_p2 = scmp.lt.s32.totalorder %s2110_s11, 4 }
  0x13   : > { %p52_p3 = por %p2677_p1, %p50_p0  ;;  %s268_s14 = sand.u32 1, %s2110_s11  }
  0x14   : > { %s270_s15 = sand.u32 1, %s2090_s29   ;;  %s1537_s17 = sshll.u32 %s2106_s10, 7 }
  0x15   : > { %s1536_s16 = sshll.u32 %s270_s15, 3  ;;  %s2701_s0 = sld [smem:[#allocation22_spill]] }
  0x16   : > { %s272_s21 = scalar_lea.vmem [#allocation4], %s1536_s16  ;;  %p2245_p4 = pnand %p2676_p2, %p52_p3 }
  0x17   : > { %s279_s22 = sshll.u32 %s272_s21, 4  ;;  %s2251_s15 = scalar_lea.sflag [#allocation5], %s268_s14  ;;  %s2249_s22 = int_to_ptr.vmem [resolvable:$true] %s279_s22 }
  0x18   : > { %p1894_p6 = pneg %p2245_p4 }
  0x1b   : > { %s2241_s20 = scalar_lea.hbm %s2701_s0, %s1537_s17  ;;  %s1897_s19 = scalar_lea.hbm %s2701_s0, 256 }
  0x1c   : > { %s1892_s18 = scalar_lea.hbm %s2241_s20, 128  ;;  %p1898_p9 = scmp.lt.u32.totalorder %s2241_s20, %s2701_s0 }
  0x1d   : > { %p1893_p5 = scmp.ne.s32.totalorder %s2241_s20, %s1892_s18  ;;  %p1899_p10 = scmp.lt.u32.totalorder %s1897_s19, %s1892_s18 }
  0x1e   : > { %p1901_p12 = scmp.lt.u32.totalorder %s1892_s18, %s2241_s20 }
  0x1f   : > { %p1895_p7 = pnand %p1894_p6, %p1893_p5  ;;  %p1900_p11 = por %p1899_p10, %p1898_p9 }
  0x21   : > { %p1896_p8 = pneg %p1895_p7  ;;  %p1902_p13 = por %p1901_p12, %p1900_p11 }
  0x23   : > { %p1903_p3 = pnand %p1902_p13, %p1896_p8 }
  0x25   : > { %1906 = shalt.err (!%p1903_p3)
}
  0x26   : > { %s1907_s14 = scalar_lea.vmem %s2249_s22, 128  ;;  %s2112_s16 = smov [#allocation4]  }
  0x27   : > { %p1908_p5 = scmp.ne.s32.totalorder %s2249_s22, %s1907_s14  ;;  %s1912_s17 = sshll.u32 %s2112_s16, 4  ;;  %s1913_s17 = int_to_ptr.vmem [resolvable:$false] %s1912_s17 }
  0x28   : > { %s1914_s13 = scalar_lea.vmem %s1913_s17, 256  ;;  %p1915_p1 = scmp.lt.s32.totalorder %s2249_s22, %s1913_s17 }
  0x29   : > { %p1910_p7 = pnand %p1908_p5, %p1894_p6  ;;  %p1916_p9 = scmp.lt.s32.totalorder %s1914_s13, %s1907_s14 }
  0x2b   : > { %p1911_p2 = pneg %p1910_p7  ;;  %p1917_p10 = por %p1916_p9, %p1915_p1 }
  0x2d   : > { %p1918_p11 = pnand %p1917_p10, %p1911_p2 }
  0x2f   : > { %1921 = shalt.err (!%p1918_p11)
}
  0x30   : > { %1750 = dma.hbm_to_vmem [thread:$0]  (!%p2245_p4), %s2241_s20, 128, %s2249_s22, %s2251_s15  }
  0x31   : > { %s2280_s18 = sadd.s32 4294967295, %s2110_s11   ;;  %s1532_s23 = sadd.s32 4294967294, %s2110_s11  }
  0x32   : > { %p56_p1 = scmp.ne.s32.totalorder %s2086_s28, %s2082_s27  ;;  %p2683_p2 = scmp.eq.s32.totalorder %s2280_s18, 0 }
  0x33   : > { %p103_p6 = scmp.ne.s32.totalorder %s2074_s25, %s2070_s24  ;;  %p231_p8 = scmp.eq.s32.totalorder %s2280_s18, 3 }
  0x34   : > { %p2291_p12 = por %p2683_p2, %p56_p1  ;;  %p237_p4 = scmp.eq.s32.totalorder %s1532_s23, 3 }
  0x35   : > { %p2297_p13 = por %p103_p6, %p2683_p2  ;;  %p2304_p3 = por %p231_p8, %p50_p0 }
  0x36   : > { %s2703_s19 = scalar_select %p2291_p12, 1, 0 }
  0x37   : > { %s2704_s20 = scalar_select %p2297_p13, 1, 0 }
  0x38   : > { %s2705_s22 = scalar_select %p2304_p3, 1, 0 }
  0x39   : > { %p2308_p5 = por %p237_p4, %p56_p1  ;;  %p1533_p7 = scmp.ge.s32.totalorder %s2110_s11, 1 }
  0x3a   : > { %2706 = sst [smem:[#allocation18_spill]] %s2705_s22  ;;  %p244_p9 = scmp.lt.s32.totalorder %s2110_s11, 5 }
  0x3b   : > { %s2707_s24 = scalar_select %p2308_p5, 1, 0 }
  0x3c   : > { %p2314_p10 = pnand %p1533_p7, %p244_p9  ;;  %s2113_s14 = smov [#allocation7]  }
  0x3d   : > { %2708 = sst [smem:[#allocation19_spill]] %s2707_s24  ;;  %s257_s16 = sshll.u32 %s2113_s14, 4  ;;  %s258_s16 = int_to_ptr.vmem [resolvable:$true] %s257_s16 }
  0x3e   : > { %s2709_s21 = scalar_select %p2314_p10, 1, 0 }
  0x3f   : > { %p1743_p11 = pneg %p2314_p10  ;;  %s33_s17 = sadd.s32 1, %s2102_s9 }
  0x40   : > { %p2327_p1 = scmp.ge.s32.totalorder %s33_s17, 2  ;;  %s288_s0 = sand.u32 1, %s2078_s26  }
  0x41   : > { %p2323_p0 = pnand %p1743_p11, %p2683_p2  ;;  %s2712_s1 = sld [smem:[#allocation23_spill]] }
  0x42   : > { %s2711_s23 = scalar_select %p2327_p1, 1, 0 }
  0x43   : > { %p1924_p4 = pneg %p2323_p0 }
  0x47   : > { %s1922_s14 = scalar_lea.hbm %s2712_s1, 128 }
  0x48   : > { %p1923_p8 = scmp.ne.s32.totalorder %s2712_s1, %s1922_s14  ;;  %p1929_p11 = scmp.lt.u32.totalorder %s1922_s14, %s2712_s1 }
  0x4a   : > { %p1925_p7 = pnand %p1924_p4, %p1923_p8 }
  0x4c   : > { %p1926_p9 = pneg %p1925_p7 }
  0x4e   : > { %p1931_p2 = pnand %p1929_p11, %p1926_p9 }
  0x50   : > { %1934 = shalt.err (!%p1931_p2)
}
  0x51   : > { %s1935_s12 = scalar_lea.vmem %s258_s16, 128  ;;  %p1943_p13 = scmp.lt.s32.totalorder %s258_s16, %s258_s16 }
  0x52   : > { %p1936_p6 = scmp.ne.s32.totalorder %s258_s16, %s1935_s12  ;;  %p1944_p12 = scmp.lt.s32.totalorder %s1935_s12, %s1935_s12 }
  0x54   : > { %p1938_p5 = pnand %p1936_p6, %p1924_p4  ;;  %p1945_p10 = por %p1944_p12, %p1943_p13 }
  0x56   : > { %p1939_p3 = pneg %p1938_p5 }
  0x58   : > { %p1946_p1 = pnand %p1945_p10, %p1939_p3 }
  0x5a   : > { %1949 = shalt.err (!%p1946_p1)
}
  0x5b   : > { %1746 = dma.hbm_to_vmem [thread:$0]  (!%p2323_p0), %s2712_s1, 128, %s258_s16, [#allocation8]  }
  0x5c   : > { %p2713_p2 = scmp.ne.s32.totalorder %s2711_s23, 0  ;;  %s2715_s6 = sadd.s32 1, %s2106_s10 }
  0x5d   : > { %p2716_p12 = scmp.eq.s32.totalorder %s2110_s11, 0  ;;  %p2717_p13 = scmp.ne.s32.totalorder %s2078_s26, %s2074_s25 }
  0x5e   : > { %s2750_s17 = smov (%p2713_p2, %s33_s17), 0  ;;  %s2752_s6 = smov (!%p2713_p2, %s2715_s6), %s2106_s10 }
  0x5f   : > { %2714 = sst [smem:[#allocation20_spill]] %s2750_s17  ;;  %s87_s8 = ssub.s32 %s2102_s9, %s2750_s17 }
  0x60   : > { %p99_p3 = por %p2717_p13, %p2716_p12  ;;  %p38_p5 = scmp.ge.s32.totalorder %s2752_s6, 2 }
  0x61   : > { %p88_p10 = scmp.eq.s32.totalorder %s87_s8, 0  ;;  %s1538_s12 = sshll.u32 %s288_s0, 3 }
  0x62   : > { %s1539_s22 = sshll.u32 %s2102_s9, 7  ;;  %s2754_s6 = smov (%p38_p5, %s2752_s6), 0 }
  0x63   : > { %2718 = sst [smem:[#allocation21_spill]] %s2754_s6  ;;  %s2719_s24 = sadd.s32 1, %s2078_s26 }
  0x64   : > { %s2373_s16 = scalar_select %p88_p10, %s2078_s26, %s2719_s24  }
  0x65   : > { %s40_s13 = ssub.s32 %s2106_s10, %s2754_s6  ;;  %s2720_s2 = sld [smem:[#allocation24_spill]] }
  0x66   : > { %p41_p0 = scmp.eq.s32.totalorder %s40_s13, 0  ;;  %s290_s27 = scalar_lea.vmem [#allocation9], %s1538_s12 }
  0x67   : > { %s297_s0 = sshll.u32 %s290_s27, 4  ;;  %p2721_p1 = scmp.lt.s32.totalorder %s2110_s11, 4  ;;  %s298_s0 = int_to_ptr.vmem [resolvable:$true] %s297_s0 }
  0x68   : > { %s2723_s24 = sadd.s32 1, %s2090_s29 }
  0x69   : > { %p2384_p6 = pnand %p2721_p1, %p99_p3 }
  0x6a   : > { %s2391_s13 = scalar_select %p41_p0, %s2090_s29, %s2723_s24  }
  0x6b   : > { %s2380_s7 = scalar_lea.hbm %s2720_s2, %s1539_s22  ;;  %p1952_p4 = pneg %p2384_p6 }
  0x6c   : > { %s1950_s23 = scalar_lea.hbm %s2380_s7, 128  ;;  %s1955_s14 = scalar_lea.hbm %s2720_s2, 256 }
  0x6d   : > { %p1951_p8 = scmp.ne.s32.totalorder %s2380_s7, %s1950_s23  ;;  %p1956_p11 = scmp.lt.u32.totalorder %s2380_s7, %s2720_s2 }
  0x6e   : > { %p1957_p2 = scmp.lt.u32.totalorder %s1955_s14, %s1950_s23  ;;  %p1959_p13 = scmp.lt.u32.totalorder %s1950_s23, %s2380_s7 }
  0x6f   : > { %p1953_p7 = pnand %p1952_p4, %p1951_p8 }
  0x70   : > { %p1958_p12 = por %p1957_p2, %p1956_p11 }
  0x71   : > { %p1954_p9 = pneg %p1953_p7 }
  0x72   : > { %p1960_p3 = por %p1959_p13, %p1958_p12 }
  0x74   : > { %p1961_p5 = pnand %p1960_p3, %p1954_p9 }
  0x76   : > { %1964 = shalt.err (!%p1961_p5)
}
  0x77   : > { %s1965_s24 = scalar_lea.vmem %s298_s0, 128  ;;  %s2114_s6 = smov [#allocation9]  }
  0x78   : > { %p1966_p10 = scmp.ne.s32.totalorder %s298_s0, %s1965_s24  ;;  %s1970_s12 = sshll.u32 %s2114_s6, 4  ;;  %s1971_s12 = int_to_ptr.vmem [resolvable:$false] %s1970_s12 }
  0x79   : > { %s1972_s22 = scalar_lea.vmem %s1971_s12, 256  ;;  %p1973_p8 = scmp.lt.s32.totalorder %s298_s0, %s1971_s12 }
  0x7a   : > { %p1968_p0 = pnand %p1966_p10, %p1952_p4  ;;  %p1974_p7 = scmp.lt.s32.totalorder %s1972_s22, %s1965_s24 }
  0x7c   : > { %p1969_p1 = pneg %p1968_p0  ;;  %p1975_p2 = por %p1974_p7, %p1973_p8 }
  0x7e   : > { %p1976_p11 = pnand %p1975_p2, %p1969_p1 }
  0x80   : > { %1979 = shalt.err (!%p1976_p11)
}
  0x81   : > { %1753 = dma.hbm_to_vmem [thread:$0]  (!%p2384_p6), %s2380_s7, 128, %s298_s0, %s2251_s15  }
  0x82   : > { %p2724_p9 = scmp.ne.s32.totalorder %s2709_s21, 0 }
  0x83   : > { %s340_s1 = sand.u32 (!%p2724_p9), 1, %s2280_s18   ;;  %s2690_s6 = sand.u32 (!%p2724_p9), 1, %s2086_s28  }
  0x84   : > { %338 = sbr.rel (%p2724_p9) target bundleno = 3648 (0xe40), region = 48  ;;  %s2421_s23 = sshll.u32 (!%p2724_p9), %s2690_s6, 3 }
  0x85   : > { %s341_s14 = scalar_lea.sflag (!%p2724_p9), [#allocation5], %s340_s1  ;;  %s344_s27 = scalar_lea.vmem (!%p2724_p9), [#allocation4], %s2421_s23 }
  0x86   : > { %p2725_p4 = scmp.ne.s32.totalorder (!%p2724_p9), %s2703_s19, 0 }
  0x8b   : > { %2053 = dma.done.wait (%p2725_p4), %s341_s14, 128  }
  0x8c   : > { %2055 = vsyncadd (%p2725_p4), %s341_s14, 4294967168  ;;  %p2726_p6 = scmp.eq.s32.totalorder %s2280_s18, 0 }
  0x8e   : > { %2057 = dma.done.wait (%p2726_p6), [#allocation8], 128   ;;  %p2727_p12 = pmov %p2726_p6 }
  0x8f   : > { %s355_s15 = sand.u32 1, %s2074_s25   ;;  %p2728_p13 = scmp.ne.s32.totalorder %s2704_s20, 0 }
  0x90   : > { %2059 = vsyncadd (%p2727_p12), [#allocation8], 4294967168  ;;  %s1543_s21 = sshll.u32 %s355_s15, 3 }
  0x91   : > { %s357_s7 = scalar_lea.vmem [#allocation9], %s1543_s21 }
  0x92   : > { %2061 = dma.done.wait (%p2728_p13), %s341_s14, 128  }
  0x93   : > { %2063 = vsyncadd (%p2728_p13), %s341_s14, 4294967168  ;;  %p413_p3 = scmp.lt.s32.totalorder %s2094_s30, 1  ;;  %s2729_s17 = sld [smem:[#allocation25_spill]]  ;;  %v2457_v0 = vld [vmem:[%s357_s7] sm:$0xff] }
  0x94   : > { %p1553_p5 = scmp.ne.s32.totalorder %s2094_s30, 0 }
  0x95   : > { %s414_s19 = scalar_select %p413_p3, %s2094_s30, 1 }
  0x96   : > { %438 = sbr.rel (%p1553_p5) target bundleno = 157 (0x9d), region = 64  ;;  %v439_v1 = vld [vmem:[%s344_s27] sm:$0xff] (!%p1553_p5)  ;;  %v440_v2 = vld [vmem:[#allocation7] sm:$0xff] (!%p1553_p5)  ;;  %vm442_vm0 = vcmask (!%p1553_p5), 261120  }
  0x97   : > { %s1582_s0 = sshll.u32 %s414_s19, 4  ;;  %s1585_s8 = sshll.u32 %s414_s19, 5  ;;  %v441_v3 = vadd.f32 (!%p1553_p5), %v440_v2, %v439_v1 }
  0x98   : > { %s417_s12 = scalar_lea.vmem %s2671_s3, %s1582_s0  ;;  %s2445_s15 = scalar_lea.vmem %s2672_s4, %s1582_s0 }
  0x99   : > { %s2450_s20 = scalar_lea.vmem %s2673_s5, %s1582_s0  ;;  %s2455_s10 = scalar_lea.vmem %s2729_s17, %s1585_s8  ;;  %443 = vst.msk [vmem:[#allocation2] sm:$0xff] (!%p1553_p5), %vm442_vm0, %v441_v3 }
  0x9a   : > { %s412_s19 = scalar_lea.vmem [#allocation10], %s2421_s23 }
  0x9d PF: > { %vm445_vm1 = vcmask 261120   ;;  %v1864_v11 = vld [vmem:[%s417_s12] sm:$0xff]   ;;  %v2115_v12 = vmov 0.0   ;;  %v1865_v13 = vld [vmem:[%s417_s12 + $0x8] sm:$0xff]   ;;  %vm2116_vm2 = vmmov 0   ;;  %v460_v16 = vlaneseq  ;;  %s2117_s2 = smov 96  }
  0x9e   : > { %1621 = vmatprep.subr.bf16.mxu1 %v2115_v12  ;;  %1635 = vmatprep.subr.bf16.mxu0 %v2115_v12  ;;  %s2118_s17 = smov 120   ;;  %s2119_s6 = smov 88   ;;  %vm544_vm3 = vcmask 64512   ;;  %vm608_vm4 = vcmask 1043456   ;;  %vm1306_vm5 = vcmask 523264  }
  0x9f   : > { %1622 = vmatpush3.bf16.msra.mxu1 %v1864_v11  ;;  %1625 = vmatprep.mubr.msk.bf16.mxu1 %vm2116_vm2, %v2115_v12  ;;  %v2471_v18 = vshrl.u32 %v460_v16, 7  ;;  %s2120_s27 = smov 64   ;;  %s2121_s7 = smov 56   ;;  %v535_v16 = vld [vmem:[%s2445_s15 + $0x4] sm:$0xf] }
  0xa0   : > { %v444_v4 = vld [vmem:[#allocation2] sm:$0xff]  ;;  %1623 = vmatprep.subr.bf16.mxu1 %v2115_v12  ;;  %1637 = vmatprep.mubr.msk.bf16.mxu0 %vm2116_vm2, %v2115_v12  ;;  %s2122_s0 = smov 80   ;;  %s2123_s8 = smov 112  }
  0xa1   : > { %v446_v5 = vsel %vm445_vm1, %v444_v4, 0.0  ;;  %v462_v19 = vsub.s32 0, %v2471_v18  ;;  %v467_v20 = vsub.s32 1, %v2471_v18  ;;  %v477_v28 = vsub.s32 2, %v2471_v18  ;;  %s2124_s24 = smov 48   ;;  %s2125_s18 = smov 104  }
  0xa2   : > { %447 = vadd.xlane.f32.xlu0 %v446_v5  ;;  %s2126_s12 = smov 72   ;;  %s2127_s22 = smov 40  }
  0xa3   : > { %1624 = vmatpush3.bf16.msra.mxu1 %v1865_v13  ;;  %v463_v21 = vrot.slane %v2457_v0, %v462_v19  ;;  %v468_v24 = vrot.slane %v2457_v0, %v467_v20  ;;  %v478_v29 = vrot.slane %v2457_v0, %v477_v28  ;;  %p1577_p10 = scmp.ne.s32.totalorder %s2094_s30, 1 }
  0xa4   : > { %1629 = vmatprep.subr.bf16.mxu1 %v2115_v12 }
 0x12f   : > { %v448_v6 = vpop.xlane.xlu0 %447 }
 0x130   : > { %v450_v7 = vmul.f32 0.03125, %v448_v6 }
 0x132   : > { %v451_v8 = vsub.f32 %v444_v4, %v450_v7 }
 0x134   : > { %v452_v9 = vmul.f32 %v451_v8, %v451_v8 }
 0x136   : > { %v453_v10 = vsel %vm445_vm1, %v452_v9, 0.0 }
 0x137   : > { %454 = vadd.xlane.f32.xlu0 %v453_v10 }
 0x1c4   : > { %v455_v14 = vpop.xlane.xlu0 %454 }
 0x1c5   : > { %v456_v15 = vmul.f32 0.03125, %v455_v14 }
 0x1c7   : > { %v457_v17 = vadd.f32 1e-05, %v456_v15 }
 0x1c9   : > { %1872 = vrsqrt.f32 %v457_v17  ;;  %v769_v17 = vsel %vm608_vm4, %v535_v16, 0 }
 0x1d3   : > { %v1873_v22 = vpop.eup %1872 }
 0x1d4   : > { %v459_v23 = vmul.f32 %v1873_v22, %v451_v8 }
 0x1d6   : > { %v464_v25 = vmul.f32 %v463_v21, %v459_v23  ;;  %v534_v23 = vld [vmem:[%s2445_s15] sm:$0xf] }
 0x1d7   : > { %v815_v28 = vsel %vm608_vm4, %v534_v23, 0 }
 0x1d8   : > { %v2477_v26 = vadd.f32 %v468_v24, %v464_v25 }
 0x1da   : > { %v470_v27 = vpack.c.bf16 %v2477_v26, %v2477_v26 }
 0x1dc   : > { %1626 = vmatmul.mubr.msk.bf16.vlgmr.msra.gmra.mrb[0].mxu1 %vm445_vm1, %v470_v27 }
 0x1dd   : > { %1631 = vmatprep.mubr.msk.bf16.mxu1 %vm2116_vm2, %v2115_v12 }
 0x2af   : > { %v528_v30 = vpop.f32.mrb[0].mxu1 }
 0x2b0   : > { %v529_v31 = vadd.f32 %v528_v30, %v478_v29  ;;  %v1627_v32 = vpop.f32.mrb[1].mxu1 }
 0x2b1   : > { %v531_v33 = vpop.f32.mrb[2].mxu1 }
 0x2b2   : > { %v538_v34 = vmul.f32 0.35355338, %v529_v31  ;;  %v2486_v35 = vpack.c.bf16 %v529_v31, %v529_v31  ;;  %v1628_v36 = vpop.f32.mrb[3].mxu1 }
 0x2b4   : > { %v2488_v37 = vpack.c.bf16 %v538_v34, %v538_v34  ;;  %542 = vrot.lane.b32.xlu1 %v2486_v35, %s2117_s2 }
 0x2b6   : > { %654 = vrot.lane.b32.xlu0 %v2488_v37, %s2118_s17 }
 0x2b8   : > { %656 = vrot.lane.b32.xlu1 %v2486_v35, %s2119_s6 }
 0x326   : > { %v543_v38 = vpop.permute.xlu1 %542 }
 0x327   : > { %v549_v39 = vsel %vm544_vm3, %v543_v38, 0 }
 0x328   : > { %1630 = vmatpush3.bf16.xpose.msra.mxu1 %v549_v39  ;;  %v655_v42 = vpop.permute.xlu0 %654 }
 0x329   : > { %1641 = vmatprep.subr.bf16.mxu1 %v2115_v12 }
 0x32a   : > { %v657_v40 = vpop.permute.xlu1 %656 }
 0x32b   : > { %v662_v41 = vsel %vm544_vm3, %v657_v40, 0 }
 0x32f   : > { %1632 = vmatmul.mubr.msk.bf16.vlgmr.msra.gmra.mrb[4].mxu1 %vm544_vm3, %v2488_v37 }
 0x330   : > { %1642 = vmatpush3.bf16.xpose.msra.mxu1 %v662_v41  ;;  %1643 = vmatprep.mubr.msk.bf16.mxu1 %vm2116_vm2, %v2115_v12 }
 0x331   : > { %1653 = vmatprep.subr.bf16.mxu1 %v2115_v12 }
 0x337   : > { %1644 = vmatmul.mubr.msk.bf16.vlgmr.msra.gmra.mrb[8].mxu1 %vm544_vm3, %v655_v42 }
 0x338   : > { %1655 = vmatprep.mubr.msk.bf16.mxu1 %vm2116_vm2, %v2115_v12  ;;  %1654 = vmatpush3.bf16.msra.mxu1 %v769_v17 }
 0x339   : > { %1659 = vmatprep.subr.bf16.mxu1 %v2115_v12 }
 0x402   : > { %v585_v43 = vpop.f32.mrb[4].mxu1 }
 0x403   : > { %v1633_v44 = vpop.f32.mrb[5].mxu1  ;;  %v591_v45 = vsel %vm544_vm3, %v585_v43, -inf }
 0x404   : > { %592 = vmax.xlane.f32.xlu1 %v591_v45  ;;  %v588_v46 = vpop.f32.mrb[6].mxu1 }
 0x405   : > { %v1634_v47 = vpop.f32.mrb[7].mxu1 }
 0x40a   : > { %v698_v48 = vpop.f32.mrb[8].mxu1 }
 0x40b   : > { %v1645_v49 = vpop.f32.mrb[9].mxu1  ;;  %v704_v50 = vsel %vm544_vm3, %v698_v48, -inf }
 0x40c   : > { %705 = vmax.xlane.f32.xlu0 %v704_v50  ;;  %v701_v51 = vpop.f32.mrb[10].mxu1 }
 0x40d   : > { %v1646_v52 = vpop.f32.mrb[11].mxu1 }
 0x40e   : > { %v536_v52 = vld [vmem:[%s2445_s15 + $0x8] sm:$0xf] }
 0x415   : > { %603 = vrot.lane.b32.xlu1 %v2486_v35, %s2120_s27 }
 0x422   : > { %716 = vrot.lane.b32.xlu0 %v2486_v35, %s2121_s7 }
 0x491   : > { %v593_v53 = vpop.xlane.xlu1 %592 }
 0x492   : > { %v594_v54 = vsub.f32 %v585_v43, %v593_v53  ;;  %v972_v53 = vsel %vm608_vm4, %v536_v52, 0  ;;  %v1870_v52 = vld [vmem:[%s2455_s10 + $0x10] sm:$0xff]  }
 0x494   : > { %v595_v55 = vmul.f32 1.442695, %v594_v54 }
 0x495   : > { %v604_v56 = vpop.permute.xlu1 %603 }
 0x496   : > { %1874 = vpow2.f32 %v595_v55  ;;  %v610_v57 = vsel %vm608_vm4, %v604_v56, 0 }
 0x497   : > { %1636 = vmatpush3.bf16.msra.mxu0 %v610_v57 }
 0x498   : > { %1647 = vmatprep.subr.bf16.mxu0 %v2115_v12 }
 0x499   : > { %v706_v58 = vpop.xlane.xlu0 %705 }
 0x49a   : > { %v707_v59 = vsub.f32 %v698_v48, %v706_v58 }
 0x49c   : > { %v708_v60 = vmul.f32 1.442695, %v707_v59 }
 0x49d   : > { %v717_v6 = vpop.permute.xlu0 %716 }
 0x49e   : > { %1876 = vpow2.f32 %v708_v60  ;;  %v722_v8 = vsel %vm608_vm4, %v717_v6, 0 }
 0x4a0   : > { %v1875_v61 = vpop.eup %1874 }
 0x4a1   : > { %v597_v62 = vsel %vm544_vm3, %v1875_v61, 0.0 }
 0x4a2   : > { %598 = vadd.xlane.f32.xlu1 %v597_v62 }
 0x4a8   : > { %v1877_v63 = vpop.eup %1876 }
 0x4a9   : > { %v710_v1 = vsel %vm544_vm3, %v1877_v63, 0.0 }
 0x4aa   : > { %711 = vadd.xlane.f32.xlu1 %v710_v1 }
 0x4bb   : > { %859 = vrot.lane.b32.xlu1 %v2486_v35, %s2122_s0 }
 0x4bf   : > { %857 = vrot.lane.b32.xlu1 %v2488_v37, %s2123_s8 }
 0x52f   : > { %v599_v2 = vpop.xlane.xlu1 %598 }
 0x530   : > { %1878 = vrcp.f32 %v599_v2 }
 0x537   : > { %v712_v3 = vpop.xlane.xlu1 %711 }
 0x538   : > { %1880 = vrcp.f32 %v712_v3 }
 0x53a   : > { %v1879_v4 = vpop.eup %1878 }
 0x53b   : > { %v601_v5 = vmul.f32 %v1879_v4, %v1875_v61  ;;  %v860_v11 = vpop.permute.xlu1 %859 }
 0x53c   : > { %v865_v14 = vsel %vm544_vm3, %v860_v11, 0 }
 0x53d   : > { %v602_v7 = vpack.c.bf16 %v601_v5, %v601_v5 }
 0x53f   : > { %1638 = vmatmul.mubr.msk.bf16.vlgmr.msra.gmra.mrb[0].mxu0 %vm544_vm3, %v602_v7  ;;  %v858_v15 = vpop.permute.xlu1 %857 }
 0x540   : > { %1648 = vmatpush3.bf16.msra.mxu0 %v722_v8  ;;  %1649 = vmatprep.mubr.msk.bf16.mxu0 %vm2116_vm2, %v2115_v12 }
 0x541   : > { %1665 = vmatprep.subr.bf16.mxu0 %v2115_v12 }
 0x542   : > { %v1881_v9 = vpop.eup %1880 }
 0x543   : > { %v714_v10 = vmul.f32 %v1881_v9, %v1877_v63 }
 0x545   : > { %v715_v13 = vpack.c.bf16 %v714_v10, %v714_v10  ;;  %v537_v10 = vld [vmem:[%s2445_s15 + $0xc] sm:$0xf] }
 0x547   : > { %1650 = vmatmul.mubr.msk.bf16.vlgmr.msra.gmra.mrb[4].mxu0 %vm544_vm3, %v715_v13 }
 0x548   : > { %1667 = vmatprep.mubr.msk.bf16.mxu0 %vm2116_vm2, %v2115_v12 }
 0x549   : > { %1666 = vmatpush3.bf16.xpose.msra.mxu0 %v865_v14  ;;  %v1130_v14 = vsel %vm608_vm4, %v537_v10, 0 }
 0x54a   : > { %1671 = vmatprep.subr.bf16.mxu0 %v2115_v12 }
 0x550   : > { %1668 = vmatmul.mubr.msk.bf16.vlgmr.msra.gmra.mrb[8].mxu0 %vm544_vm3, %v858_v15 }
 0x551   : > { %1673 = vmatprep.mubr.msk.bf16.mxu0 %vm2116_vm2, %v2115_v12 }
 0x612   : > { %v646_v19 = vpop.f32.mrb[0].mxu0 }
 0x613   : > { %v1639_v20 = vpop.f32.mrb[1].mxu0  ;;  %v652_v38 = vpack.c.bf16 %v646_v19, %v646_v19 }
 0x614   : > { %v649_v21 = vpop.f32.mrb[2].mxu0 }
 0x615   : > { %v1640_v22 = vpop.f32.mrb[3].mxu0 }
 0x61a   : > { %v758_v24 = vpop.f32.mrb[4].mxu0 }
 0x61b   : > { %v764_v25 = vpack.c.bf16 %v758_v24, %v758_v24  ;;  %v1651_v27 = vpop.f32.mrb[5].mxu0  ;;  %v1178_v24 = vsub.s32 3, %v2471_v18 }
 0x61c   : > { %v761_v29 = vpop.f32.mrb[6].mxu0 }
 0x61d   : > { %v1652_v30 = vpop.f32.mrb[7].mxu0  ;;  %1656 = vmatmul.mubr.msk.bf16.vlgmr.msra.gmra.mrb[12].mxu1 %vm544_vm3, %v764_v25  ;;  %v1179_v25 = vrot.slane %v2457_v0, %v1178_v24 }
 0x61e   : > { %1660 = vmatpush3.bf16.msra.mxu1 %v815_v28  ;;  %1661 = vmatprep.mubr.msk.bf16.mxu1 %vm2116_vm2, %v2115_v12 }
 0x61f   : > { %1677 = vmatprep.subr.bf16.mxu1 %v2115_v12 }
 0x623   : > { %v901_v31 = vpop.f32.mrb[8].mxu0 }
 0x624   : > { %v1669_v32 = vpop.f32.mrb[9].mxu0  ;;  %v907_v33 = vsel %vm544_vm3, %v901_v31, -inf }
 0x625   : > { %908 = vmax.xlane.f32.xlu1 %v907_v33  ;;  %v904_v34 = vpop.f32.mrb[10].mxu0 }
 0x626   : > { %v1670_v36 = vpop.f32.mrb[11].mxu0 }
 0x629   : > { %1662 = vmatmul.mubr.msk.bf16.vlgmr.msra.gmra.mrb[12].mxu1 %vm544_vm3, %v652_v38  ;;  %v1866_v38 = vld [vmem:[%s2450_s20] sm:$0xff]  }
 0x62a   : > { %1679 = vmatprep.mubr.msk.bf16.mxu1 %vm2116_vm2, %v2115_v12  ;;  %1678 = vmatpush3.bf16.msra.mxu1 %v972_v53  ;;  %v1871_v53 = vld [vmem:[%s2455_s10 + $0x18] sm:$0xff]  }
 0x62b   : > { %1689 = vmatprep.subr.bf16.mxu1 %v2115_v12 }
 0x636   : > { %919 = vrot.lane.b32.xlu1 %v2486_v35, %s2124_s24 }
 0x63a   : > { %1015 = vrot.lane.b32.xlu1 %v2488_v37, %s2125_s18 }
 0x6b2   : > { %v909_v39 = vpop.xlane.xlu1 %908 }
 0x6b3   : > { %v910_v40 = vsub.f32 %v901_v31, %v909_v39  ;;  %v1867_v39 = vld [vmem:[%s2450_s20 + $0x8] sm:$0xff]  }
 0x6b5   : > { %v911_v41 = vmul.f32 1.442695, %v910_v40 }
 0x6b6   : > { %v920_v42 = vpop.permute.xlu1 %919 }
 0x6b7   : > { %1882 = vpow2.f32 %v911_v41  ;;  %v925_v43 = vsel %vm608_vm4, %v920_v42, 0  ;;  %v1196_v42 = vsub.s32 4, %v2471_v18 }
 0x6b8   : > { %1672 = vmatpush3.bf16.msra.mxu0 %v925_v43  ;;  %v1201_v43 = vsub.s32 5, %v2471_v18 }
 0x6b9   : > { %1683 = vmatprep.subr.bf16.mxu0 %v2115_v12 }
 0x6ba   : > { %v1016_v51 = vpop.permute.xlu1 %1015 }
 0x6c1   : > { %v1883_v44 = vpop.eup %1882 }
 0x6c2   : > { %v913_v45 = vsel %vm544_vm3, %v1883_v44, 0.0 }
 0x6c3   : > { %914 = vadd.xlane.f32.xlu0 %v913_v45 }
 0x6d9   : > { %1017 = vrot.lane.b32.xlu0 %v2486_v35, %s2126_s12 }
 0x750   : > { %v915_v46 = vpop.xlane.xlu0 %914 }
 0x751   : > { %1884 = vrcp.f32 %v915_v46 }
 0x754   : > { %v1018_v48 = vpop.permute.xlu0 %1017 }
 0x755   : > { %v1023_v50 = vsel %vm544_vm3, %v1018_v48, 0 }
 0x75b   : > { %v1885_v37 = vpop.eup %1884 }
 0x75c   : > { %v917_v47 = vmul.f32 %v1885_v37, %v1883_v44  ;;  %v1197_v44 = vrot.slane %v2457_v0, %v1196_v42  ;;  %v1202_v37 = vrot.slane %v2457_v0, %v1201_v43 }
 0x75e   : > { %v918_v49 = vpack.c.bf16 %v917_v47, %v917_v47 }
 0x760   : > { %1674 = vmatmul.mubr.msk.bf16.vlgmr.msra.gmra.mrb[12].mxu0 %vm544_vm3, %v918_v49  ;;  %v1868_v49 = vld [vmem:[%s2455_s10] sm:$0xff]  }
 0x761   : > { %1684 = vmatpush3.bf16.xpose.msra.mxu0 %v1023_v50  ;;  %1685 = vmatprep.mubr.msk.bf16.mxu0 %vm2116_vm2, %v2115_v12 }
 0x762   : > { %1701 = vmatprep.subr.bf16.mxu0 %v2115_v12 }
 0x768   : > { %1686 = vmatmul.mubr.msk.bf16.vlgmr.msra.gmra.mrb[16].mxu0 %vm544_vm3, %v1016_v51  ;;  %v1869_v51 = vld [vmem:[%s2455_s10 + $0x8] sm:$0xff]  }
 0x769   : > { %1705 = vmatprep.mubr.msk.bf16.mxu0 %vm2116_vm2, %v2115_v12  ;;  %1702 = vmatpush3.bf16.msra.mxu0 %v1866_v38 }
 0x76a   : > { %1703 = vmatprep.subr.bf16.mxu0 %v2115_v12 }
 0x76d   : > { %1704 = vmatpush3.bf16.msra.mxu0 %v1867_v39 }
 0x76e   : > { %1709 = vmatprep.subr.bf16.mxu0 %v2115_v12 }
 0x833   : > { %v961_v54 = vpop.f32.mrb[12].mxu0 }
 0x834   : > { %v967_v55 = vpack.c.bf16 %v961_v54, %v961_v54  ;;  %v1675_v56 = vpop.f32.mrb[13].mxu0  ;;  %v1211_v54 = vsub.s32 6, %v2471_v18 }
 0x835   : > { %v964_v57 = vpop.f32.mrb[14].mxu0 }
 0x836   : > { %v1676_v58 = vpop.f32.mrb[15].mxu0  ;;  %1680 = vmatmul.mubr.msk.bf16.vlgmr.msra.gmra.mrb[12].mxu1 %vm544_vm3, %v967_v55  ;;  %v1212_v55 = vrot.slane %v2457_v0, %v1211_v54 }
 0x837   : > { %1691 = vmatprep.mubr.msk.bf16.mxu1 %vm2116_vm2, %v2115_v12 }
 0x83b   : > { %v1059_v59 = vpop.f32.mrb[16].mxu0 }
 0x83c   : > { %v1687_v60 = vpop.f32.mrb[17].mxu0  ;;  %v1065_v61 = vsel %vm544_vm3, %v1059_v59, -inf }
 0x83d   : > { %1066 = vmax.xlane.f32.xlu1 %v1065_v61  ;;  %v1062_v62 = vpop.f32.mrb[18].mxu0 }
 0x83e   : > { %v1688_v63 = vpop.f32.mrb[19].mxu0 }
 0x83f   : > { %v1280_v63 = vsub.s32 7, %v2471_v18 }
 0x8ca   : > { %v1067_v1 = vpop.xlane.xlu1 %1066 }
 0x8cb   : > { %v1068_v2 = vsub.f32 %v1059_v59, %v1067_v1  ;;  %v1281_v1 = vrot.slane %v2457_v0, %v1280_v63 }
 0x8cd   : > { %v1069_v3 = vmul.f32 1.442695, %v1068_v2 }
 0x8cf   : > { %1886 = vpow2.f32 %v1069_v3 }
 0x8d9   : > { %v1887_v4 = vpop.eup %1886 }
 0x8da   : > { %v1071_v5 = vsel %vm544_vm3, %v1887_v4, 0.0 }
 0x8db   : > { %1072 = vadd.xlane.f32.xlu0 %v1071_v5 }
 0x8f1   : > { %1077 = vrot.lane.b32.xlu0 %v2486_v35, %s2127_s22 }
 0x968   : > { %v1073_v6 = vpop.xlane.xlu0 %1072 }
 0x969   : > { %1888 = vrcp.f32 %v1073_v6 }
 0x96c   : > { %v1078_v7 = vpop.permute.xlu0 %1077 }
 0x96d   : > { %v1083_v8 = vsel %vm608_vm4, %v1078_v7, 0 }
 0x96e   : > { %1690 = vmatpush3.bf16.msra.mxu1 %v1083_v8 }
 0x96f   : > { %1695 = vmatprep.subr.bf16.mxu1 %v2115_v12 }
 0x973   : > { %v1889_v9 = vpop.eup %1888 }
 0x974   : > { %v1075_v11 = vmul.f32 %v1889_v9, %v1887_v4 }
 0x976   : > { %v1076_v13 = vpack.c.bf16 %v1075_v11, %v1075_v11 }
 0x978   : > { %1692 = vmatmul.mubr.msk.bf16.vlgmr.msra.gmra.mrb[16].mxu1 %vm544_vm3, %v1076_v13 }
 0x979   : > { %1696 = vmatpush3.bf16.msra.mxu1 %v1130_v14  ;;  %1697 = vmatprep.mubr.msk.bf16.mxu1 %vm2116_vm2, %v2115_v12 }
 0xa4b   : > { %v1119_v35 = vpop.f32.mrb[16].mxu1 }
 0xa4c   : > { %v1125_v15 = vpack.c.bf16 %v1119_v35, %v1119_v35  ;;  %v1693_v16 = vpop.f32.mrb[17].mxu1 }
 0xa4d   : > { %v1122_v17 = vpop.f32.mrb[18].mxu1 }
 0xa4e   : > { %v1694_v19 = vpop.f32.mrb[19].mxu1  ;;  %1698 = vmatmul.mubr.msk.bf16.vlgmr.msra.gmra.mrb[12].mxu1 %vm544_vm3, %v1125_v15 }
 0xb21   : > { %v1166_v20 = vpop.f32.mrb[12].mxu1 }
 0xb22   : > { %1173 = vst.msk [vmem:[#allocation3] sm:$0xff] %vm445_vm1, %v1166_v20  ;;  %v1699_v21 = vpop.f32.mrb[13].mxu1 }
 0xb23   : > { %v1169_v22 = vpop.f32.mrb[14].mxu1 }
 0xb24   : > { %v1700_v23 = vpop.f32.mrb[15].mxu1 }
 0xb29   : > { %v1174_v27 = vld [vmem:[#allocation3] sm:$0xff] }
 0xb2a   : > { %v1175_v28 = vadd.f32 %v1174_v27, %v2477_v26 }
 0xb2c   : > { %v1180_v29 = vadd.f32 %v1179_v25, %v1175_v28 }
 0xb2e   : > { %v1181_v30 = vsel %vm445_vm1, %v1180_v29, 0.0 }
 0xb2f   : > { %1182 = vadd.xlane.f32.xlu1 %v1181_v30 }
 0xbbc   : > { %v1183_v31 = vpop.xlane.xlu1 %1182 }
 0xbbd   : > { %v1184_v32 = vmul.f32 0.03125, %v1183_v31 }
 0xbbf   : > { %v1185_v33 = vsub.f32 %v1180_v29, %v1184_v32 }
 0xbc1   : > { %v1186_v34 = vmul.f32 %v1185_v33, %v1185_v33 }
 0xbc3   : > { %v1187_v36 = vsel %vm445_vm1, %v1186_v34, 0.0 }
 0xbc4   : > { %1188 = vadd.xlane.f32.xlu1 %v1187_v36 }
 0xc51   : > { %v1189_v26 = vpop.xlane.xlu1 %1188 }
 0xc52   : > { %v1190_v40 = vmul.f32 0.03125, %v1189_v26 }
 0xc54   : > { %v1191_v41 = vadd.f32 1e-05, %v1190_v40 }
 0xc56   : > { %1890 = vrsqrt.f32 %v1191_v41 }
 0xc60   : > { %v1891_v45 = vpop.eup %1890 }
 0xc61   : > { %v1193_v46 = vmul.f32 %v1891_v45, %v1185_v33 }
 0xc63   : > { %v1198_v47 = vmul.f32 %v1197_v44, %v1193_v46 }
 0xc65   : > { %v1203_v48 = vadd.f32 %v1202_v37, %v1198_v47 }
 0xc67   : > { %v1204_v50 = vpack.c.bf16 %v1203_v48, %v1203_v48 }
 0xc69   : > { %1706 = vmatmul.mubr.msk.bf16.vlgmr.msra.gmra.mrb[20].mxu0 %vm445_vm1, %v1204_v50 }
 0xc6a   : > { %1710 = vmatpush3.bf16.msra.mxu0 %v1868_v49  ;;  %1717 = vmatprep.mubr.msk.bf16.mxu0 %vm2116_vm2, %v2115_v12 }
 0xc6b   : > { %1711 = vmatprep.subr.bf16.mxu0 %v2115_v12 }
 0xc6e   : > { %1712 = vmatpush3.bf16.msra.mxu0 %v1869_v51 }
 0xc6f   : > { %1713 = vmatprep.subr.bf16.mxu0 %v2115_v12 }
 0xc72   : > { %1714 = vmatpush3.bf16.msra.mxu0 %v1870_v52 }
 0xc73   : > { %1715 = vmatprep.subr.bf16.mxu0 %v2115_v12 }
 0xc76   : > { %1716 = vmatpush3.bf16.msra.mxu0 %v1871_v53 }
 0xd3c   : > { %v1262_v56 = vpop.f32.mrb[20].mxu0 }
 0xd3d   : > { %v1263_v57 = vadd.f32 %v1262_v56, %v1212_v55  ;;  %v1707_v58 = vpop.f32.mrb[21].mxu0 }
 0xd3e   : > { %v1265_v59 = vpop.f32.mrb[22].mxu0 }
 0xd3f   : > { %v1268_v60 = vmax.f32 %v1263_v57, 0.0  ;;  %v1708_v61 = vpop.f32.mrb[23].mxu0 }
 0xd41   : > { %v1269_v62 = vpack.c.bf16 %v1268_v60, %v1268_v60 }
 0xd43   : > { %1718 = vmatmul.mubr.msk.bf16.vlgmr.msra.gmra.mrb[24].mxu0 %vm1306_vm5, %v1269_v62 }
 0xe15   : > { %1355 = sbr.rel (%p1577_p10) target bundleno = 3620 (0xe24), region = 68 }
 0xe16   : > { %v1344_v12 = vpop.f32.mrb[24].mxu0 }
 0xe17   : > { %v1345_v2 = vadd.f32 %v1344_v12, %v1281_v1  ;;  %v1719_v3 = vpop.f32.mrb[25].mxu0 }
 0xe18   : > { %v1347_v4 = vpop.f32.mrb[26].mxu0 }
 0xe19   : > { %v1350_v5 = vadd.f32 %v1345_v2, %v1203_v48  ;;  %v1720_v6 = vpop.f32.mrb[27].mxu0 }
 0xe1b   : > { %1351 = vst.msk [vmem:[#allocation2] sm:$0xff] %vm445_vm1, %v1350_v5 }
 0xe22   : > { %v1356_v7 = vld [vmem:[#allocation2] sm:$0xff] }
 0xe23   : > { %1357 = vst.msk [vmem:[%s412_s19] sm:$0xff] %vm445_vm1, %v1356_v7 }
 0xe24 PF: > { %s2730_s10 = sld [smem:[#allocation16_spill]]  ;;  %s2731_s1 = sld [smem:[#allocation18_spill]] }
 0xe25   : > { %s2732_s14 = sld [smem:[#allocation26_spill]]  ;;  %s1372_s17 = sshll.u32 %s412_s19, 4  ;;  %s1373_s17 = int_to_ptr.vmem [resolvable:$true] %s1372_s17 }
 0xe26   : > { %s2733_s30 = sand.u32 1, %s2086_s28   ;;  %s1980_s27 = scalar_lea.vmem %s1373_s17, 128 }
 0xe27   : > { %s1359_s6 = scalar_lea.sflag [#allocation6], %s2733_s30  ;;  %p1981_p0 = scmp.ne.s32.totalorder %s1373_s17, %s1980_s27 }
 0xe28   : > { %s2128_s7 = smov [#allocation10]  }
 0xe29   : > { %s1984_s0 = sshll.u32 %s2128_s7, 4  ;;  %s1985_s0 = int_to_ptr.vmem [resolvable:$false] %s1984_s0 }
 0xe2a   : > { %s1579_s15 = sshll.u32 %s2730_s10, 7  ;;  %p2734_p1 = scmp.ne.s32.totalorder %s2731_s1, 0 }
 0xe2b   : > { %s2608_s2 = scalar_lea.hbm %s2732_s14, %s1579_s15  ;;  %s1986_s8 = scalar_lea.vmem %s1985_s0, 256 }
 0xe2c   : > { %p1982_p8 = pnand %p1981_p0, %p2734_p1  ;;  %p1987_p2 = scmp.lt.s32.totalorder %s1373_s17, %s1985_s0 }
 0xe2d   : > { %p1988_p11 = scmp.lt.s32.totalorder %s1986_s8, %s1980_s27 }
 0xe2e   : > { %p1983_p7 = pneg %p1982_p8 }
 0xe2f   : > { %p1989_p9 = por %p1988_p11, %p1987_p2 }
 0xe31   : > { %p1990_p4 = pnand %p1989_p9, %p1983_p7 }
 0xe33   : > { %1993 = shalt.err (!%p1990_p4)
}
 0xe34   : > { %s1994_s23 = scalar_lea.hbm %s2608_s2, 128  ;;  %s1998_s18 = scalar_lea.hbm %s2732_s14, 256 }
 0xe35   : > { %p1995_p6 = scmp.ne.s32.totalorder %s2608_s2, %s1994_s23  ;;  %p1999_p3 = scmp.lt.u32.totalorder %s2608_s2, %s2732_s14 }
 0xe36   : > { %p2000_p5 = scmp.lt.u32.totalorder %s1998_s18, %s1994_s23  ;;  %p2002_p0 = scmp.lt.u32.totalorder %s1994_s23, %s2608_s2 }
 0xe37   : > { %p1996_p12 = pnand %p1995_p6, %p2734_p1 }
 0xe38   : > { %p2001_p10 = por %p2000_p5, %p1999_p3 }
 0xe39   : > { %p1997_p13 = pneg %p1996_p12 }
 0xe3a   : > { %p2003_p8 = por %p2002_p0, %p2001_p10 }
 0xe3c   : > { %p2004_p7 = pnand %p2003_p8, %p1997_p13 }
 0xe3e   : > { %2007 = shalt.err (!%p2004_p7)
}
 0xe3f   : > { %1741 = dma.vmem_to_hbm [thread:$0]  (%p2734_p1), %s1373_s17, 128, %s2608_s2, %s1359_s6  }
 0xe40 PF: > { %s2735_s10 = sld [smem:[#allocation15_spill]]  ;;  %s2736_s15 = sld [smem:[#allocation19_spill]] }
 0xe41   : > { %p1761_p2 = scmp.ge.s32.totalorder %s2110_s11, 2 }
 0xe46   : > { %s1384_s21 = sand.u32 1, %s2735_s10   ;;  %p2737_p11 = scmp.ne.s32.totalorder %s2736_s15, 0 }
 0xe47   : > { %s1385_s20 = scalar_lea.sflag [#allocation6], %s1384_s21 }
 0xe48   : > { %p1755_p9 = pnand %p1761_p2, %p2737_p11 }
 0xe4a   : > { %2065 = dma.done.wait (!%p1755_p9), %s1385_s20, 128  }
 0xe4b   : > { %2067 = vsyncadd (!%p1755_p9), %s1385_s20, 4294967168  ;;  %s24_s11 = sadd.s32 1, %s2110_s11   ;;  %s2738_s8 = sld [smem:[#allocation17_spill]] }
 0xe4c   : > { %p21_p4 = scmp.ge.s32.totalorder %s24_s11, 6   ;;  %s2739_s1 = sld [smem:[#allocation20_spill]] }
 0xe4d   : > { %s2740_s10 = sld [smem:[#allocation21_spill]]  ;;  %s2741_s24 = smov %s2074_s25 }
 0xe4e   : > { %s2742_s25 = smov %s2078_s26  ;;  %s2743_s26 = smov %s2373_s16 }
 0xe4f   : > { %s2744_s27 = smov %s2086_s28  ;;  %s2745_s28 = smov %s2090_s29 }
 0xe50   : > { %s2746_s29 = smov %s2391_s13  ;;  %s2747_s30 = smov %s2102_s9 }
 0xe51   :  { %23 = sbr.rel (!%p21_p4) target bundleno = 16 (0x10), region = 128 }
 0xe52   : > { %s2748_s9 = smov %s2739_s1 }
 0xe58   :  { %1390 = vsyncpa [#allocation5], 1 }
 0xe59   :  { %1392 = vsyncpa [#allocation5 + $0x1], 1 }
 0xe5a   :  { %1393 = vsyncpa [#allocation8], 1 }
 0xe5b   :  { %1394 = vsyncpa [#allocation6], 1 }
 0xe5c   :  { %1396 = vsyncpa [#allocation6 + $0x1], 1 }

</bundles_post_ra>
